<compile_context>
chip_gen: v6e
topology: v6e:2x2x1
jax: 0.10.0
libtpu: 0.0.40
codegen_flags: <defaults>
</compile_context>

<pallas_src>
import jax
import jax.numpy as jnp
from jax.experimental import pallas as pl
from jax.experimental.pallas import tpu as pltpu

EPS = 1e-5     # BatchNorm1d default eps
SLOPE = 0.01   # LeakyReLU default negative_slope

# Row layout of the packed vector slab (widths in units of E):
#   row 0: gamma0 (4E)   row 1: beta0 (4E)
#   row 2: bias1  (8E)   row 3: gamma1 (8E)   row 4: beta1 (8E)
#   row 5: bias2 (16E)   row 6: gamma2 (16E)  row 7: beta2 (16E)
#   row 8: bias3  (8E)   row 9: gamma3 (8E)   row 10: beta3 (8E)
#   row 11: bias4 (2E)   row 12: gamma4 (2E)  row 13: beta4 (2E)
#   rows 14-15: zero padding (sublane alignment)
# Each row is [P-half | S-half]; for split layers the kernel slices the halves.
_VEC_ROWS = 16


# ---------------------------------------------------------------------------
# Fused kernel: whole forward pass (MXU matmuls, BN/softmax on VPU/EUP/XLU)
# ---------------------------------------------------------------------------
def mutualistic_kernel(cons_ref, raw_ref, soc_ref, vec_ref, w1_ref,
                       w2s_hbm, w3s_hbm, w4_hbm, out_ref,
                       w2_buf, w3_buf, w4_buf, dma_sem):
    B, out_w = out_ref.shape
    E = out_w // 4

    # ---- Prefetch later-layer weights (HBM -> VMEM) behind layer-0/1 compute.
    cp2 = pltpu.make_async_copy(w2s_hbm, w2_buf, dma_sem.at[0]); cp2.start()
    cp3 = pltpu.make_async_copy(w3s_hbm, w3_buf, dma_sem.at[1]); cp3.start()
    cp4 = pltpu.make_async_copy(w4_hbm, w4_buf, dma_sem.at[2]); cp4.start()

    def vrow(row, lo, hi):
        # [1, hi-lo] parameter slice; broadcasts over the batch (sublane) axis.
        # TODO(synk): could use a stride-0 sublane-broadcast load
        # (vec_ref[pl.ds(row, B, stride=0), lo:hi]) to skip the broadcast op.
        return vec_ref[row:row + 1, lo:hi]

    def bn(h, g_row, b_row, lo, hi):
        # BatchNorm1d, training mode (batch mean / biased batch variance).
        # One-pass stats: mean(h) and mean(h*h) are independent reductions.
        # Kept in f32 and clamped >= 0 (E[x^2]-mean^2 can round slightly <0).
        mean = jnp.mean(h, axis=0, keepdims=True)
        msq = jnp.mean(h * h, axis=0, keepdims=True)
        var = jnp.maximum(msq - mean * mean, 0.0)
        return ((h - mean) * jax.lax.rsqrt(var + EPS) * vrow(g_row, lo, hi)
                + vrow(b_row, lo, hi))

    def mm(a, w):
        # MXU matmul: bf16 (default) or f32 inputs, f32 accumulation.
        return jnp.dot(a.astype(w.dtype), w, preferred_element_type=jnp.float32)

    # Layer-0 input built in-kernel: [xP | xS] = [cons|raw | soc|raw] -> [B,4E]
    x = jnp.concatenate(
        [cons_ref[...], raw_ref[...], soc_ref[...], raw_ref[...]], axis=1)

    # ---- BN0 + Linear1: combined block-diagonal (P/S columns never mix) -----
    h = bn(x, 0, 1, 0, 4 * E)
    h = mm(h, w1_ref[...]) + vrow(2, 0, 8 * E)                 # [B, 8E]
    h = bn(h, 3, 4, 0, 8 * E)

    # ---- Linear2 + BN2: split per-MLP weights --------------------------------
    cp2.wait()
    hP = mm(h[:, :4 * E], w2_buf[0]) + vrow(5, 0, 8 * E)       # [B, 8E]
    hS = mm(h[:, 4 * E:], w2_buf[1]) + vrow(5, 8 * E, 16 * E)  # [B, 8E]
    hP = bn(hP, 6, 7, 0, 8 * E)
    hS = bn(hS, 6, 7, 8 * E, 16 * E)

    # ---- Linear3 + BN3: split per-MLP weights --------------------------------
    cp3.wait()
    hP = mm(hP, w3_buf[0]) + vrow(8, 0, 4 * E)                 # [B, 4E]
    hS = mm(hS, w3_buf[1]) + vrow(8, 4 * E, 8 * E)             # [B, 4E]
    hP = bn(hP, 9, 10, 0, 4 * E)
    hS = bn(hS, 9, 10, 4 * E, 8 * E)

    # ---- Linear4 + BN4 + LeakyReLU: combined block-diagonal again -------------
    cp4.wait()
    h = jnp.concatenate([hP, hS], axis=1)                      # [B, 8E] (128-aligned)
    h = mm(h, w4_buf[...]) + vrow(11, 0, 2 * E)                # [B, 2E]
    h = bn(h, 12, 13, 0, 2 * E)
    h = jnp.where(h > 0, h, SLOPE * h)                         # LeakyReLU

    h_uP = h[:, :E]
    h_uS = h[:, E:]
    h_m = h_uP * h_uS + h_uP + h_uS

    def softmax_rows(z):
        m = jnp.max(z, axis=1, keepdims=True)
        e = jnp.exp(z - m)
        # approx reciprocal runs on the EUP; tiny relative error vs exact divide.
        return e * pl.reciprocal(jnp.sum(e, axis=1, keepdims=True), approx=True)

    # Single unmasked full-width [B, 4E] store:
    # [h_m*sm(h_uP) | h_uP | h_m*sm(h_uS) | h_uS]
    out_ref[...] = jnp.concatenate(
        [h_m * softmax_rows(h_uP), h_uP, h_m * softmax_rows(h_uS), h_uS], axis=1)


# ---------------------------------------------------------------------------
# Parameter init (deterministic, PyTorch-default-like) and packing
# ---------------------------------------------------------------------------
def init_mlp_params(key, e):
    """Per-MLP raw params.
    Order: [g0,be0, W1,b1, g1,be1, W2,b2, g2,be2, W3,b3, g3,be3, W4,b4, g4,be4]."""
    dims = [2 * e, 4 * e, 8 * e, 4 * e, e]
    keys = jax.random.split(key, 8)
    params = []
    ki = 0
    for i in range(4):
        fan_in, fan_out = dims[i], dims[i + 1]
        params.append(jnp.ones((fan_in,), jnp.float32))    # BN gamma
        params.append(jnp.zeros((fan_in,), jnp.float32))   # BN beta
        bound = fan_in ** -0.5
        W = jax.random.uniform(keys[ki], (fan_in, fan_out), jnp.float32,
                               -bound, bound)
        ki += 1
        b = jax.random.uniform(keys[ki], (fan_out,), jnp.float32,
                               -bound, bound)
        ki += 1
        params += [W, b]
    params.append(jnp.ones((dims[-1],), jnp.float32))       # final BN gamma
    params.append(jnp.zeros((dims[-1],), jnp.float32))      # final BN beta
    return params


def pack_params(params_P, params_S, e):
    """Pack both MLPs into (vec_slab [16,16E], W1c, W2 stacked, W3 stacked, W4c)."""
    def grab(p):
        return ([p[i] for i in (0, 4, 8, 12, 16)],   # gammas
                [p[i] for i in (1, 5, 9, 13, 17)],   # betas
                [p[i] for i in (2, 6, 10, 14)],      # weights
                [p[i] for i in (3, 7, 11, 15)])      # biases

    gP, beP, WP, bP = grab(params_P)
    gS, beS, WS, bS = grab(params_S)

    max_w = 16 * e

    def row(vP, vS):
        v = jnp.concatenate([vP.reshape(-1), vS.reshape(-1)])
        return jnp.pad(v, (0, max_w - v.shape[0]))

    rows = [
        row(gP[0], gS[0]), row(beP[0], beS[0]),
        row(bP[0], bS[0]), row(gP[1], gS[1]), row(beP[1], beS[1]),
        row(bP[1], bS[1]), row(gP[2], gS[2]), row(beP[2], beS[2]),
        row(bP[2], bS[2]), row(gP[3], gS[3]), row(beP[3], beS[3]),
        row(bP[3], bS[3]), row(gP[4], gS[4]), row(beP[4], beS[4]),
    ]
    while len(rows) < _VEC_ROWS:
        rows.append(jnp.zeros((max_w,), jnp.float32))
    vec = jnp.stack(rows, axis=0)                       # [16, 16E]

    def block_diag(A, B):
        m1, n1 = A.shape
        m2, n2 = B.shape
        top = jnp.concatenate([A, jnp.zeros((m1, n2), A.dtype)], axis=1)
        bot = jnp.concatenate([jnp.zeros((m2, n1), B.dtype), B], axis=1)
        return jnp.concatenate([top, bot], axis=0)

    W1 = block_diag(WP[0], WS[0])                       # [4E, 8E]
    W2s = jnp.stack([WP[1], WS[1]], axis=0)             # [2, 4E, 8E] (no zero blocks)
    W3s = jnp.stack([WP[2], WS[2]], axis=0)             # [2, 8E, 4E]
    W4 = block_diag(WP[3], WS[3])                       # [8E, 2E]
    return vec, W1, W2s, W3s, W4


# ---------------------------------------------------------------------------
# Wrapper: input/output glue in plain JAX, hot path in the fused kernel
# ---------------------------------------------------------------------------
def mutualistic_forward(raw_embed, consumption_pref, social_pref, packed,
                        use_bf16_matmul=True):
    vec, W1, W2s, W3s, W4 = packed
    B, E = raw_embed.shape
    mm_dtype = jnp.bfloat16 if use_bf16_matmul else jnp.float32
    # bf16 weights (default): f32 accumulation preserved inside the kernel.
    W1, W2s, W3s, W4 = (w.astype(mm_dtype) for w in (W1, W2s, W3s, W4))

    # TODO(synk): BN uses full-batch statistics so the batch stays in one block.
    # For larger / repeated batches, add a leading grid axis over independent
    # batches with the weight BlockSpecs pinned to block 0 (weight-resident),
    # budget VMEM against v7x's 64 MiB (set vmem_limit_bytes explicitly), and
    # on v7x split the P/S chains across the two TensorCores.
    out = pl.pallas_call(
        mutualistic_kernel,
        out_shape=jax.ShapeDtypeStruct((B, 4 * E), jnp.float32),
        # No grid: single invocation, activations + params resident in VMEM.
        in_specs=[
            pl.BlockSpec(memory_space=pltpu.MemorySpace.VMEM),   # consumption_pref
            pl.BlockSpec(memory_space=pltpu.MemorySpace.VMEM),   # raw_embed
            pl.BlockSpec(memory_space=pltpu.MemorySpace.VMEM),   # social_pref
            pl.BlockSpec(memory_space=pltpu.MemorySpace.VMEM),   # packed vec slab
            pl.BlockSpec(memory_space=pltpu.MemorySpace.VMEM),   # W1 (combined)
            pl.BlockSpec(memory_space=pl.ANY),                   # W2 stacked (HBM)
            pl.BlockSpec(memory_space=pl.ANY),                   # W3 stacked (HBM)
            pl.BlockSpec(memory_space=pl.ANY),                   # W4 combined (HBM)
        ],
        out_specs=pl.BlockSpec(memory_space=pltpu.MemorySpace.VMEM),
        scratch_shapes=[
            pltpu.VMEM((2, 4 * E, 8 * E), mm_dtype),   # W2P / W2S
            pltpu.VMEM((2, 8 * E, 4 * E), mm_dtype),   # W3P / W3S
            pltpu.VMEM((8 * E, 2 * E), mm_dtype),      # W4 (block-diagonal)
            pltpu.SemaphoreType.DMA((3,)),
        ],
    )(consumption_pref, raw_embed, social_pref, vec, W1, W2s, W3s, W4)

    # Lane-dense [B,4E] slab -> (h_mP, h_mS), each [B,2E], matching PyTorch.
    return out[:, :2 * E], out[:, 2 * E:]


if __name__ == "__main__":
    key = jax.random.PRNGKey(0)
    B, E = 16, 32  # batch=16, embedding_size=32
    k1, k2, k3, k4, k5 = jax.random.split(key, 5)

    raw_embed = jax.random.normal(k1, (B, E), jnp.float32)
    consumption_pref = jax.random.normal(k2, (B, E), jnp.float32)
    social_pref = jax.random.normal(k3, (B, E), jnp.float32)

    params_P = init_mlp_params(k4, E)  # consumption_mlp
    params_S = init_mlp_params(k5, E)  # social_mlp
    packed = pack_params(params_P, params_S, E)

    fwd = jax.jit(mutualistic_forward)
    h_mP, h_mS = fwd(raw_embed, consumption_pref, social_pref, packed)
    jax.block_until_ready((h_mP, h_mS))

    assert h_mP.shape == (B, 2 * E) and h_mS.shape == (B, 2 * E)
    assert bool(jnp.all(jnp.isfinite(h_mP))) and bool(jnp.all(jnp.isfinite(h_mS)))
    print("KERNEL_OK")
</pallas_src>

<mosaic_0001>
module attributes {stable_mosaic.version = 11 : i64} {
  func.func @mutualistic_kernel(%arg0: memref<16x32xf32, #tpu.memory_space<vmem>>, %arg1: memref<16x32xf32, #tpu.memory_space<vmem>>, %arg2: memref<16x32xf32, #tpu.memory_space<vmem>>, %arg3: memref<16x512xf32, #tpu.memory_space<vmem>>, %arg4: memref<128x256xbf16, #tpu.memory_space<vmem>>, %arg5: memref<2x128x256xbf16, #tpu.memory_space<any>>, %arg6: memref<2x256x128xbf16, #tpu.memory_space<any>>, %arg7: memref<256x64xbf16, #tpu.memory_space<any>>, %arg8: memref<16x128xf32, #tpu.memory_space<vmem>>, %arg9: memref<2x128x256xbf16, #tpu.memory_space<vmem>>, %arg10: memref<2x256x128xbf16, #tpu.memory_space<vmem>>, %arg11: memref<256x64xbf16, #tpu.memory_space<vmem>>, %arg12: memref<3x!tpu.dma_semaphore, #tpu.memory_space<semaphore_mem>>) attributes {dimension_semantics = [], scalar_prefetch = 0 : i64, scratch_operands = 4 : i64, tpu.core_type = #tpu.core_type<tc>} {
    %c0_i32 = arith.constant 0 : i32
    %0 = tpu.memref_slice %arg12[%c0_i32] : memref<3x!tpu.dma_semaphore, #tpu.memory_space<semaphore_mem>> -> memref<1x!tpu.dma_semaphore, #tpu.memory_space<semaphore_mem>>
    %1 = tpu.memref_squeeze %0 : memref<1x!tpu.dma_semaphore, #tpu.memory_space<semaphore_mem>> -> memref<!tpu.dma_semaphore, #tpu.memory_space<semaphore_mem>>
    tpu.enqueue_dma source(%arg5 : memref<2x128x256xbf16, #tpu.memory_space<any>>) target(%arg9 : memref<2x128x256xbf16, #tpu.memory_space<vmem>>) target_semaphore(%1 : memref<!tpu.dma_semaphore, #tpu.memory_space<semaphore_mem>>)
    %c1_i32 = arith.constant 1 : i32
    %2 = tpu.memref_slice %arg12[%c1_i32] : memref<3x!tpu.dma_semaphore, #tpu.memory_space<semaphore_mem>> -> memref<1x!tpu.dma_semaphore, #tpu.memory_space<semaphore_mem>>
    %3 = tpu.memref_squeeze %2 : memref<1x!tpu.dma_semaphore, #tpu.memory_space<semaphore_mem>> -> memref<!tpu.dma_semaphore, #tpu.memory_space<semaphore_mem>>
    tpu.enqueue_dma source(%arg6 : memref<2x256x128xbf16, #tpu.memory_space<any>>) target(%arg10 : memref<2x256x128xbf16, #tpu.memory_space<vmem>>) target_semaphore(%3 : memref<!tpu.dma_semaphore, #tpu.memory_space<semaphore_mem>>)
    %c2_i32 = arith.constant 2 : i32
    %4 = tpu.memref_slice %arg12[%c2_i32] : memref<3x!tpu.dma_semaphore, #tpu.memory_space<semaphore_mem>> -> memref<1x!tpu.dma_semaphore, #tpu.memory_space<semaphore_mem>>
    %5 = tpu.memref_squeeze %4 : memref<1x!tpu.dma_semaphore, #tpu.memory_space<semaphore_mem>> -> memref<!tpu.dma_semaphore, #tpu.memory_space<semaphore_mem>>
    tpu.enqueue_dma source(%arg7 : memref<256x64xbf16, #tpu.memory_space<any>>) target(%arg11 : memref<256x64xbf16, #tpu.memory_space<vmem>>) target_semaphore(%5 : memref<!tpu.dma_semaphore, #tpu.memory_space<semaphore_mem>>)
    %c0 = arith.constant 0 : index
    %c0_0 = arith.constant 0 : index
    %6 = vector.load %arg0[%c0, %c0_0] : memref<16x32xf32, #tpu.memory_space<vmem>>, vector<16x32xf32>
    %c0_1 = arith.constant 0 : index
    %c0_2 = arith.constant 0 : index
    %7 = vector.load %arg1[%c0_1, %c0_2] : memref<16x32xf32, #tpu.memory_space<vmem>>, vector<16x32xf32>
    %c0_3 = arith.constant 0 : index
    %c0_4 = arith.constant 0 : index
    %8 = vector.load %arg2[%c0_3, %c0_4] : memref<16x32xf32, #tpu.memory_space<vmem>>, vector<16x32xf32>
    %c0_5 = arith.constant 0 : index
    %c0_6 = arith.constant 0 : index
    %9 = vector.load %arg1[%c0_5, %c0_6] : memref<16x32xf32, #tpu.memory_space<vmem>>, vector<16x32xf32>
    %10 = tpu.concatenate %6, %7, %8, %9 in 1 : vector<16x32xf32>, vector<16x32xf32>, vector<16x32xf32>, vector<16x32xf32> -> vector<16x128xf32>
    %cst = arith.constant dense<0.000000e+00> : vector<128xf32>
    %11 = vector.multi_reduction <add>, %10, %cst [0] : vector<16x128xf32> to vector<128xf32>
    %12 = vector.shape_cast %11 : vector<128xf32> to vector<1x128xf32>
    %cst_7 = arith.constant 1.600000e+01 : f32
    %13 = vector.broadcast %cst_7 : f32 to vector<1x128xf32>
    %14 = arith.divf %12, %13 : vector<1x128xf32>
    %15 = arith.mulf %10, %10 : vector<16x128xf32>
    %cst_8 = arith.constant dense<0.000000e+00> : vector<128xf32>
    %16 = vector.multi_reduction <add>, %15, %cst_8 [0] : vector<16x128xf32> to vector<128xf32>
    %17 = vector.shape_cast %16 : vector<128xf32> to vector<1x128xf32>
    %cst_9 = arith.constant 1.600000e+01 : f32
    %18 = vector.broadcast %cst_9 : f32 to vector<1x128xf32>
    %19 = arith.divf %17, %18 : vector<1x128xf32>
    %20 = arith.mulf %14, %14 : vector<1x128xf32>
    %21 = arith.subf %19, %20 : vector<1x128xf32>
    %cst_10 = arith.constant 0.000000e+00 : f32
    %22 = vector.broadcast %cst_10 : f32 to vector<1x128xf32>
    %23 = arith.maximumf %21, %22 : vector<1x128xf32>
    %24 = vector.broadcast %14 : vector<1x128xf32> to vector<16x128xf32>
    %25 = arith.subf %10, %24 : vector<16x128xf32>
    %cst_11 = arith.constant 9.99999974E-6 : f32
    %26 = vector.broadcast %cst_11 : f32 to vector<1x128xf32>
    %27 = arith.addf %23, %26 : vector<1x128xf32>
    %28 = math.rsqrt %27 : vector<1x128xf32>
    %29 = vector.broadcast %28 : vector<1x128xf32> to vector<16x128xf32>
    %30 = arith.mulf %25, %29 : vector<16x128xf32>
    %c0_12 = arith.constant 0 : index
    %c0_13 = arith.constant 0 : index
    %31 = vector.load %arg3[%c0_12, %c0_13] : memref<16x512xf32, #tpu.memory_space<vmem>>, vector<1x128xf32>
    %32 = vector.broadcast %31 : vector<1x128xf32> to vector<16x128xf32>
    %33 = arith.mulf %30, %32 : vector<16x128xf32>
    %c1 = arith.constant 1 : index
    %c0_14 = arith.constant 0 : index
    %34 = vector.load %arg3[%c1, %c0_14] : memref<16x512xf32, #tpu.memory_space<vmem>>, vector<1x128xf32>
    %35 = vector.broadcast %34 : vector<1x128xf32> to vector<16x128xf32>
    %36 = arith.addf %33, %35 : vector<16x128xf32>
    %c0_15 = arith.constant 0 : index
    %c0_16 = arith.constant 0 : index
    %37 = vector.load %arg4[%c0_15, %c0_16] : memref<128x256xbf16, #tpu.memory_space<vmem>>, vector<128x256xbf16>
    %38 = arith.truncf %36 : vector<16x128xf32> to vector<16x128xbf16>
    %cst_17 = arith.constant dense<0.000000e+00> : vector<16x256xf32>
    %39 = tpu.matmul %38, %37, %cst_17 {dimension_numbers = #tpu.dot_dimension_numbers<[1], [0], [0], [1], [0, 0, 1, 1], [], []>} : vector<16x128xbf16>, vector<128x256xbf16>, vector<16x256xf32> -> vector<16x256xf32>
    %c2 = arith.constant 2 : index
    %c0_18 = arith.constant 0 : index
    %40 = vector.load %arg3[%c2, %c0_18] : memref<16x512xf32, #tpu.memory_space<vmem>>, vector<1x256xf32>
    %41 = vector.broadcast %40 : vector<1x256xf32> to vector<16x256xf32>
    %42 = arith.addf %39, %41 : vector<16x256xf32>
    %cst_19 = arith.constant dense<0.000000e+00> : vector<256xf32>
    %43 = vector.multi_reduction <add>, %42, %cst_19 [0] : vector<16x256xf32> to vector<256xf32>
    %44 = vector.shape_cast %43 : vector<256xf32> to vector<1x256xf32>
    %cst_20 = arith.constant 1.600000e+01 : f32
    %45 = vector.broadcast %cst_20 : f32 to vector<1x256xf32>
    %46 = arith.divf %44, %45 : vector<1x256xf32>
    %47 = arith.mulf %42, %42 : vector<16x256xf32>
    %cst_21 = arith.constant dense<0.000000e+00> : vector<256xf32>
    %48 = vector.multi_reduction <add>, %47, %cst_21 [0] : vector<16x256xf32> to vector<256xf32>
    %49 = vector.shape_cast %48 : vector<256xf32> to vector<1x256xf32>
    %cst_22 = arith.constant 1.600000e+01 : f32
    %50 = vector.broadcast %cst_22 : f32 to vector<1x256xf32>
    %51 = arith.divf %49, %50 : vector<1x256xf32>
    %52 = arith.mulf %46, %46 : vector<1x256xf32>
    %53 = arith.subf %51, %52 : vector<1x256xf32>
    %cst_23 = arith.constant 0.000000e+00 : f32
    %54 = vector.broadcast %cst_23 : f32 to vector<1x256xf32>
    %55 = arith.maximumf %53, %54 : vector<1x256xf32>
    %56 = vector.broadcast %46 : vector<1x256xf32> to vector<16x256xf32>
    %57 = arith.subf %42, %56 : vector<16x256xf32>
    %cst_24 = arith.constant 9.99999974E-6 : f32
    %58 = vector.broadcast %cst_24 : f32 to vector<1x256xf32>
    %59 = arith.addf %55, %58 : vector<1x256xf32>
    %60 = math.rsqrt %59 : vector<1x256xf32>
    %61 = vector.broadcast %60 : vector<1x256xf32> to vector<16x256xf32>
    %62 = arith.mulf %57, %61 : vector<16x256xf32>
    %c3 = arith.constant 3 : index
    %c0_25 = arith.constant 0 : index
    %63 = vector.load %arg3[%c3, %c0_25] : memref<16x512xf32, #tpu.memory_space<vmem>>, vector<1x256xf32>
    %64 = vector.broadcast %63 : vector<1x256xf32> to vector<16x256xf32>
    %65 = arith.mulf %62, %64 : vector<16x256xf32>
    %c4 = arith.constant 4 : index
    %c0_26 = arith.constant 0 : index
    %66 = vector.load %arg3[%c4, %c0_26] : memref<16x512xf32, #tpu.memory_space<vmem>>, vector<1x256xf32>
    %67 = vector.broadcast %66 : vector<1x256xf32> to vector<16x256xf32>
    %68 = arith.addf %65, %67 : vector<16x256xf32>
    %c0_i32_27 = arith.constant 0 : i32
    %69 = tpu.memref_slice %arg12[%c0_i32_27] : memref<3x!tpu.dma_semaphore, #tpu.memory_space<semaphore_mem>> -> memref<1x!tpu.dma_semaphore, #tpu.memory_space<semaphore_mem>>
    %70 = tpu.memref_squeeze %69 : memref<1x!tpu.dma_semaphore, #tpu.memory_space<semaphore_mem>> -> memref<!tpu.dma_semaphore, #tpu.memory_space<semaphore_mem>>
    tpu.wait_dma2 semaphore(%70 : memref<!tpu.dma_semaphore, #tpu.memory_space<semaphore_mem>>) src(%arg5 : memref<2x128x256xbf16, #tpu.memory_space<any>>) dst(%arg9 : memref<2x128x256xbf16, #tpu.memory_space<vmem>>)
    %71 = vector.extract_strided_slice %68 {offsets = [0, 0], sizes = [16, 128], strides = [1, 1]} : vector<16x256xf32> to vector<16x128xf32>
    %c0_28 = arith.constant 0 : index
    %c0_29 = arith.constant 0 : index
    %c0_30 = arith.constant 0 : index
    %72 = vector.load %arg9[%c0_28, %c0_29, %c0_30] : memref<2x128x256xbf16, #tpu.memory_space<vmem>>, vector<1x128x256xbf16>
    %73 = vector.shape_cast %72 : vector<1x128x256xbf16> to vector<128x256xbf16>
    %74 = arith.truncf %71 : vector<16x128xf32> to vector<16x128xbf16>
    %cst_31 = arith.constant dense<0.000000e+00> : vector<16x256xf32>
    %75 = tpu.matmul %74, %73, %cst_31 {dimension_numbers = #tpu.dot_dimension_numbers<[1], [0], [0], [1], [0, 0, 1, 1], [], []>} : vector<16x128xbf16>, vector<128x256xbf16>, vector<16x256xf32> -> vector<16x256xf32>
    %c5 = arith.constant 5 : index
    %c0_32 = arith.constant 0 : index
    %76 = vector.load %arg3[%c5, %c0_32] : memref<16x512xf32, #tpu.memory_space<vmem>>, vector<1x256xf32>
    %77 = vector.broadcast %76 : vector<1x256xf32> to vector<16x256xf32>
    %78 = arith.addf %75, %77 : vector<16x256xf32>
    %79 = vector.extract_strided_slice %68 {offsets = [0, 128], sizes = [16, 128], strides = [1, 1]} : vector<16x256xf32> to vector<16x128xf32>
    %c1_33 = arith.constant 1 : index
    %c0_34 = arith.constant 0 : index
    %c0_35 = arith.constant 0 : index
    %80 = vector.load %arg9[%c1_33, %c0_34, %c0_35] : memref<2x128x256xbf16, #tpu.memory_space<vmem>>, vector<1x128x256xbf16>
    %81 = vector.shape_cast %80 : vector<1x128x256xbf16> to vector<128x256xbf16>
    %82 = arith.truncf %79 : vector<16x128xf32> to vector<16x128xbf16>
    %cst_36 = arith.constant dense<0.000000e+00> : vector<16x256xf32>
    %83 = tpu.matmul %82, %81, %cst_36 {dimension_numbers = #tpu.dot_dimension_numbers<[1], [0], [0], [1], [0, 0, 1, 1], [], []>} : vector<16x128xbf16>, vector<128x256xbf16>, vector<16x256xf32> -> vector<16x256xf32>
    %c5_37 = arith.constant 5 : index
    %c256 = arith.constant 256 : index
    %84 = vector.load %arg3[%c5_37, %c256] : memref<16x512xf32, #tpu.memory_space<vmem>>, vector<1x256xf32>
    %85 = vector.broadcast %84 : vector<1x256xf32> to vector<16x256xf32>
    %86 = arith.addf %83, %85 : vector<16x256xf32>
    %cst_38 = arith.constant dense<0.000000e+00> : vector<256xf32>
    %87 = vector.multi_reduction <add>, %78, %cst_38 [0] : vector<16x256xf32> to vector<256xf32>
    %88 = vector.shape_cast %87 : vector<256xf32> to vector<1x256xf32>
    %cst_39 = arith.constant 1.600000e+01 : f32
    %89 = vector.broadcast %cst_39 : f32 to vector<1x256xf32>
    %90 = arith.divf %88, %89 : vector<1x256xf32>
    %91 = arith.mulf %78, %78 : vector<16x256xf32>
    %cst_40 = arith.constant dense<0.000000e+00> : vector<256xf32>
    %92 = vector.multi_reduction <add>, %91, %cst_40 [0] : vector<16x256xf32> to vector<256xf32>
    %93 = vector.shape_cast %92 : vector<256xf32> to vector<1x256xf32>
    %cst_41 = arith.constant 1.600000e+01 : f32
    %94 = vector.broadcast %cst_41 : f32 to vector<1x256xf32>
    %95 = arith.divf %93, %94 : vector<1x256xf32>
    %96 = arith.mulf %90, %90 : vector<1x256xf32>
    %97 = arith.subf %95, %96 : vector<1x256xf32>
    %cst_42 = arith.constant 0.000000e+00 : f32
    %98 = vector.broadcast %cst_42 : f32 to vector<1x256xf32>
    %99 = arith.maximumf %97, %98 : vector<1x256xf32>
    %100 = vector.broadcast %90 : vector<1x256xf32> to vector<16x256xf32>
    %101 = arith.subf %78, %100 : vector<16x256xf32>
    %cst_43 = arith.constant 9.99999974E-6 : f32
    %102 = vector.broadcast %cst_43 : f32 to vector<1x256xf32>
    %103 = arith.addf %99, %102 : vector<1x256xf32>
    %104 = math.rsqrt %103 : vector<1x256xf32>
    %105 = vector.broadcast %104 : vector<1x256xf32> to vector<16x256xf32>
    %106 = arith.mulf %101, %105 : vector<16x256xf32>
    %c6 = arith.constant 6 : index
    %c0_44 = arith.constant 0 : index
    %107 = vector.load %arg3[%c6, %c0_44] : memref<16x512xf32, #tpu.memory_space<vmem>>, vector<1x256xf32>
    %108 = vector.broadcast %107 : vector<1x256xf32> to vector<16x256xf32>
    %109 = arith.mulf %106, %108 : vector<16x256xf32>
    %c7 = arith.constant 7 : index
    %c0_45 = arith.constant 0 : index
    %110 = vector.load %arg3[%c7, %c0_45] : memref<16x512xf32, #tpu.memory_space<vmem>>, vector<1x256xf32>
    %111 = vector.broadcast %110 : vector<1x256xf32> to vector<16x256xf32>
    %112 = arith.addf %109, %111 : vector<16x256xf32>
    %cst_46 = arith.constant dense<0.000000e+00> : vector<256xf32>
    %113 = vector.multi_reduction <add>, %86, %cst_46 [0] : vector<16x256xf32> to vector<256xf32>
    %114 = vector.shape_cast %113 : vector<256xf32> to vector<1x256xf32>
    %cst_47 = arith.constant 1.600000e+01 : f32
    %115 = vector.broadcast %cst_47 : f32 to vector<1x256xf32>
    %116 = arith.divf %114, %115 : vector<1x256xf32>
    %117 = arith.mulf %86, %86 : vector<16x256xf32>
    %cst_48 = arith.constant dense<0.000000e+00> : vector<256xf32>
    %118 = vector.multi_reduction <add>, %117, %cst_48 [0] : vector<16x256xf32> to vector<256xf32>
    %119 = vector.shape_cast %118 : vector<256xf32> to vector<1x256xf32>
    %cst_49 = arith.constant 1.600000e+01 : f32
    %120 = vector.broadcast %cst_49 : f32 to vector<1x256xf32>
    %121 = arith.divf %119, %120 : vector<1x256xf32>
    %122 = arith.mulf %116, %116 : vector<1x256xf32>
    %123 = arith.subf %121, %122 : vector<1x256xf32>
    %cst_50 = arith.constant 0.000000e+00 : f32
    %124 = vector.broadcast %cst_50 : f32 to vector<1x256xf32>
    %125 = arith.maximumf %123, %124 : vector<1x256xf32>
    %126 = vector.broadcast %116 : vector<1x256xf32> to vector<16x256xf32>
    %127 = arith.subf %86, %126 : vector<16x256xf32>
    %cst_51 = arith.constant 9.99999974E-6 : f32
    %128 = vector.broadcast %cst_51 : f32 to vector<1x256xf32>
    %129 = arith.addf %125, %128 : vector<1x256xf32>
    %130 = math.rsqrt %129 : vector<1x256xf32>
    %131 = vector.broadcast %130 : vector<1x256xf32> to vector<16x256xf32>
    %132 = arith.mulf %127, %131 : vector<16x256xf32>
    %c6_52 = arith.constant 6 : index
    %c256_53 = arith.constant 256 : index
    %133 = vector.load %arg3[%c6_52, %c256_53] : memref<16x512xf32, #tpu.memory_space<vmem>>, vector<1x256xf32>
    %134 = vector.broadcast %133 : vector<1x256xf32> to vector<16x256xf32>
    %135 = arith.mulf %132, %134 : vector<16x256xf32>
    %c7_54 = arith.constant 7 : index
    %c256_55 = arith.constant 256 : index
    %136 = vector.load %arg3[%c7_54, %c256_55] : memref<16x512xf32, #tpu.memory_space<vmem>>, vector<1x256xf32>
    %137 = vector.broadcast %136 : vector<1x256xf32> to vector<16x256xf32>
    %138 = arith.addf %135, %137 : vector<16x256xf32>
    %c1_i32_56 = arith.constant 1 : i32
    %139 = tpu.memref_slice %arg12[%c1_i32_56] : memref<3x!tpu.dma_semaphore, #tpu.memory_space<semaphore_mem>> -> memref<1x!tpu.dma_semaphore, #tpu.memory_space<semaphore_mem>>
    %140 = tpu.memref_squeeze %139 : memref<1x!tpu.dma_semaphore, #tpu.memory_space<semaphore_mem>> -> memref<!tpu.dma_semaphore, #tpu.memory_space<semaphore_mem>>
    tpu.wait_dma2 semaphore(%140 : memref<!tpu.dma_semaphore, #tpu.memory_space<semaphore_mem>>) src(%arg6 : memref<2x256x128xbf16, #tpu.memory_space<any>>) dst(%arg10 : memref<2x256x128xbf16, #tpu.memory_space<vmem>>)
    %c0_57 = arith.constant 0 : index
    %c0_58 = arith.constant 0 : index
    %c0_59 = arith.constant 0 : index
    %141 = vector.load %arg10[%c0_57, %c0_58, %c0_59] : memref<2x256x128xbf16, #tpu.memory_space<vmem>>, vector<1x256x128xbf16>
    %142 = vector.shape_cast %141 : vector<1x256x128xbf16> to vector<256x128xbf16>
    %143 = arith.truncf %112 : vector<16x256xf32> to vector<16x256xbf16>
    %cst_60 = arith.constant dense<0.000000e+00> : vector<16x128xf32>
    %144 = tpu.matmul %143, %142, %cst_60 {dimension_numbers = #tpu.dot_dimension_numbers<[1], [0], [0], [1], [0, 0, 1, 1], [], []>} : vector<16x256xbf16>, vector<256x128xbf16>, vector<16x128xf32> -> vector<16x128xf32>
    %c8 = arith.constant 8 : index
    %c0_61 = arith.constant 0 : index
    %145 = vector.load %arg3[%c8, %c0_61] : memref<16x512xf32, #tpu.memory_space<vmem>>, vector<1x128xf32>
    %146 = vector.broadcast %145 : vector<1x128xf32> to vector<16x128xf32>
    %147 = arith.addf %144, %146 : vector<16x128xf32>
    %c1_62 = arith.constant 1 : index
    %c0_63 = arith.constant 0 : index
    %c0_64 = arith.constant 0 : index
    %148 = vector.load %arg10[%c1_62, %c0_63, %c0_64] : memref<2x256x128xbf16, #tpu.memory_space<vmem>>, vector<1x256x128xbf16>
    %149 = vector.shape_cast %148 : vector<1x256x128xbf16> to vector<256x128xbf16>
    %150 = arith.truncf %138 : vector<16x256xf32> to vector<16x256xbf16>
    %cst_65 = arith.constant dense<0.000000e+00> : vector<16x128xf32>
    %151 = tpu.matmul %150, %149, %cst_65 {dimension_numbers = #tpu.dot_dimension_numbers<[1], [0], [0], [1], [0, 0, 1, 1], [], []>} : vector<16x256xbf16>, vector<256x128xbf16>, vector<16x128xf32> -> vector<16x128xf32>
    %c8_66 = arith.constant 8 : index
    %c128 = arith.constant 128 : index
    %152 = vector.load %arg3[%c8_66, %c128] : memref<16x512xf32, #tpu.memory_space<vmem>>, vector<1x128xf32>
    %153 = vector.broadcast %152 : vector<1x128xf32> to vector<16x128xf32>
    %154 = arith.addf %151, %153 : vector<16x128xf32>
    %cst_67 = arith.constant dense<0.000000e+00> : vector<128xf32>
    %155 = vector.multi_reduction <add>, %147, %cst_67 [0] : vector<16x128xf32> to vector<128xf32>
    %156 = vector.shape_cast %155 : vector<128xf32> to vector<1x128xf32>
    %cst_68 = arith.constant 1.600000e+01 : f32
    %157 = vector.broadcast %cst_68 : f32 to vector<1x128xf32>
    %158 = arith.divf %156, %157 : vector<1x128xf32>
    %159 = arith.mulf %147, %147 : vector<16x128xf32>
    %cst_69 = arith.constant dense<0.000000e+00> : vector<128xf32>
    %160 = vector.multi_reduction <add>, %159, %cst_69 [0] : vector<16x128xf32> to vector<128xf32>
    %161 = vector.shape_cast %160 : vector<128xf32> to vector<1x128xf32>
    %cst_70 = arith.constant 1.600000e+01 : f32
    %162 = vector.broadcast %cst_70 : f32 to vector<1x128xf32>
    %163 = arith.divf %161, %162 : vector<1x128xf32>
    %164 = arith.mulf %158, %158 : vector<1x128xf32>
    %165 = arith.subf %163, %164 : vector<1x128xf32>
    %cst_71 = arith.constant 0.000000e+00 : f32
    %166 = vector.broadcast %cst_71 : f32 to vector<1x128xf32>
    %167 = arith.maximumf %165, %166 : vector<1x128xf32>
    %168 = vector.broadcast %158 : vector<1x128xf32> to vector<16x128xf32>
    %169 = arith.subf %147, %168 : vector<16x128xf32>
    %cst_72 = arith.constant 9.99999974E-6 : f32
    %170 = vector.broadcast %cst_72 : f32 to vector<1x128xf32>
    %171 = arith.addf %167, %170 : vector<1x128xf32>
    %172 = math.rsqrt %171 : vector<1x128xf32>
    %173 = vector.broadcast %172 : vector<1x128xf32> to vector<16x128xf32>
    %174 = arith.mulf %169, %173 : vector<16x128xf32>
    %c9 = arith.constant 9 : index
    %c0_73 = arith.constant 0 : index
    %175 = vector.load %arg3[%c9, %c0_73] : memref<16x512xf32, #tpu.memory_space<vmem>>, vector<1x128xf32>
    %176 = vector.broadcast %175 : vector<1x128xf32> to vector<16x128xf32>
    %177 = arith.mulf %174, %176 : vector<16x128xf32>
    %c10 = arith.constant 10 : index
    %c0_74 = arith.constant 0 : index
    %178 = vector.load %arg3[%c10, %c0_74] : memref<16x512xf32, #tpu.memory_space<vmem>>, vector<1x128xf32>
    %179 = vector.broadcast %178 : vector<1x128xf32> to vector<16x128xf32>
    %180 = arith.addf %177, %179 : vector<16x128xf32>
    %cst_75 = arith.constant dense<0.000000e+00> : vector<128xf32>
    %181 = vector.multi_reduction <add>, %154, %cst_75 [0] : vector<16x128xf32> to vector<128xf32>
    %182 = vector.shape_cast %181 : vector<128xf32> to vector<1x128xf32>
    %cst_76 = arith.constant 1.600000e+01 : f32
    %183 = vector.broadcast %cst_76 : f32 to vector<1x128xf32>
    %184 = arith.divf %182, %183 : vector<1x128xf32>
    %185 = arith.mulf %154, %154 : vector<16x128xf32>
    %cst_77 = arith.constant dense<0.000000e+00> : vector<128xf32>
    %186 = vector.multi_reduction <add>, %185, %cst_77 [0] : vector<16x128xf32> to vector<128xf32>
    %187 = vector.shape_cast %186 : vector<128xf32> to vector<1x128xf32>
    %cst_78 = arith.constant 1.600000e+01 : f32
    %188 = vector.broadcast %cst_78 : f32 to vector<1x128xf32>
    %189 = arith.divf %187, %188 : vector<1x128xf32>
    %190 = arith.mulf %184, %184 : vector<1x128xf32>
    %191 = arith.subf %189, %190 : vector<1x128xf32>
    %cst_79 = arith.constant 0.000000e+00 : f32
    %192 = vector.broadcast %cst_79 : f32 to vector<1x128xf32>
    %193 = arith.maximumf %191, %192 : vector<1x128xf32>
    %194 = vector.broadcast %184 : vector<1x128xf32> to vector<16x128xf32>
    %195 = arith.subf %154, %194 : vector<16x128xf32>
    %cst_80 = arith.constant 9.99999974E-6 : f32
    %196 = vector.broadcast %cst_80 : f32 to vector<1x128xf32>
    %197 = arith.addf %193, %196 : vector<1x128xf32>
    %198 = math.rsqrt %197 : vector<1x128xf32>
    %199 = vector.broadcast %198 : vector<1x128xf32> to vector<16x128xf32>
    %200 = arith.mulf %195, %199 : vector<16x128xf32>
    %c9_81 = arith.constant 9 : index
    %c128_82 = arith.constant 128 : index
    %201 = vector.load %arg3[%c9_81, %c128_82] : memref<16x512xf32, #tpu.memory_space<vmem>>, vector<1x128xf32>
    %202 = vector.broadcast %201 : vector<1x128xf32> to vector<16x128xf32>
    %203 = arith.mulf %200, %202 : vector<16x128xf32>
    %c10_83 = arith.constant 10 : index
    %c128_84 = arith.constant 128 : index
    %204 = vector.load %arg3[%c10_83, %c128_84] : memref<16x512xf32, #tpu.memory_space<vmem>>, vector<1x128xf32>
    %205 = vector.broadcast %204 : vector<1x128xf32> to vector<16x128xf32>
    %206 = arith.addf %203, %205 : vector<16x128xf32>
    %c2_i32_85 = arith.constant 2 : i32
    %207 = tpu.memref_slice %arg12[%c2_i32_85] : memref<3x!tpu.dma_semaphore, #tpu.memory_space<semaphore_mem>> -> memref<1x!tpu.dma_semaphore, #tpu.memory_space<semaphore_mem>>
    %208 = tpu.memref_squeeze %207 : memref<1x!tpu.dma_semaphore, #tpu.memory_space<semaphore_mem>> -> memref<!tpu.dma_semaphore, #tpu.memory_space<semaphore_mem>>
    tpu.wait_dma2 semaphore(%208 : memref<!tpu.dma_semaphore, #tpu.memory_space<semaphore_mem>>) src(%arg7 : memref<256x64xbf16, #tpu.memory_space<any>>) dst(%arg11 : memref<256x64xbf16, #tpu.memory_space<vmem>>)
    %209 = tpu.concatenate %180, %206 in 1 : vector<16x128xf32>, vector<16x128xf32> -> vector<16x256xf32>
    %c0_86 = arith.constant 0 : index
    %c0_87 = arith.constant 0 : index
    %210 = vector.load %arg11[%c0_86, %c0_87] : memref<256x64xbf16, #tpu.memory_space<vmem>>, vector<256x64xbf16>
    %211 = arith.truncf %209 : vector<16x256xf32> to vector<16x256xbf16>
    %cst_88 = arith.constant dense<0.000000e+00> : vector<16x64xf32>
    %212 = tpu.matmul %211, %210, %cst_88 {dimension_numbers = #tpu.dot_dimension_numbers<[1], [0], [0], [1], [0, 0, 1, 1], [], []>} : vector<16x256xbf16>, vector<256x64xbf16>, vector<16x64xf32> -> vector<16x64xf32>
    %c11 = arith.constant 11 : index
    %c0_89 = arith.constant 0 : index
    %213 = vector.load %arg3[%c11, %c0_89] : memref<16x512xf32, #tpu.memory_space<vmem>>, vector<1x64xf32>
    %214 = vector.broadcast %213 : vector<1x64xf32> to vector<16x64xf32>
    %215 = arith.addf %212, %214 : vector<16x64xf32>
    %cst_90 = arith.constant dense<0.000000e+00> : vector<64xf32>
    %216 = vector.multi_reduction <add>, %215, %cst_90 [0] : vector<16x64xf32> to vector<64xf32>
    %217 = vector.shape_cast %216 : vector<64xf32> to vector<1x64xf32>
    %cst_91 = arith.constant 1.600000e+01 : f32
    %218 = vector.broadcast %cst_91 : f32 to vector<1x64xf32>
    %219 = arith.divf %217, %218 : vector<1x64xf32>
    %220 = arith.mulf %215, %215 : vector<16x64xf32>
    %cst_92 = arith.constant dense<0.000000e+00> : vector<64xf32>
    %221 = vector.multi_reduction <add>, %220, %cst_92 [0] : vector<16x64xf32> to vector<64xf32>
    %222 = vector.shape_cast %221 : vector<64xf32> to vector<1x64xf32>
    %cst_93 = arith.constant 1.600000e+01 : f32
    %223 = vector.broadcast %cst_93 : f32 to vector<1x64xf32>
    %224 = arith.divf %222, %223 : vector<1x64xf32>
    %225 = arith.mulf %219, %219 : vector<1x64xf32>
    %226 = arith.subf %224, %225 : vector<1x64xf32>
    %cst_94 = arith.constant 0.000000e+00 : f32
    %227 = vector.broadcast %cst_94 : f32 to vector<1x64xf32>
    %228 = arith.maximumf %226, %227 : vector<1x64xf32>
    %229 = vector.broadcast %219 : vector<1x64xf32> to vector<16x64xf32>
    %230 = arith.subf %215, %229 : vector<16x64xf32>
    %cst_95 = arith.constant 9.99999974E-6 : f32
    %231 = vector.broadcast %cst_95 : f32 to vector<1x64xf32>
    %232 = arith.addf %228, %231 : vector<1x64xf32>
    %233 = math.rsqrt %232 : vector<1x64xf32>
    %234 = vector.broadcast %233 : vector<1x64xf32> to vector<16x64xf32>
    %235 = arith.mulf %230, %234 : vector<16x64xf32>
    %c12 = arith.constant 12 : index
    %c0_96 = arith.constant 0 : index
    %236 = vector.load %arg3[%c12, %c0_96] : memref<16x512xf32, #tpu.memory_space<vmem>>, vector<1x64xf32>
    %237 = vector.broadcast %236 : vector<1x64xf32> to vector<16x64xf32>
    %238 = arith.mulf %235, %237 : vector<16x64xf32>
    %c13 = arith.constant 13 : index
    %c0_97 = arith.constant 0 : index
    %239 = vector.load %arg3[%c13, %c0_97] : memref<16x512xf32, #tpu.memory_space<vmem>>, vector<1x64xf32>
    %240 = vector.broadcast %239 : vector<1x64xf32> to vector<16x64xf32>
    %241 = arith.addf %238, %240 : vector<16x64xf32>
    %cst_98 = arith.constant 0.000000e+00 : f32
    %242 = vector.broadcast %cst_98 : f32 to vector<16x64xf32>
    %243 = arith.cmpf ogt, %241, %242 : vector<16x64xf32>
    %cst_99 = arith.constant 0.00999999977 : f32
    %244 = vector.broadcast %cst_99 : f32 to vector<16x64xf32>
    %245 = arith.mulf %244, %241 : vector<16x64xf32>
    %246 = arith.select %243, %241, %245 : vector<16x64xi1>, vector<16x64xf32>
    %247 = vector.extract_strided_slice %246 {offsets = [0, 0], sizes = [16, 32], strides = [1, 1]} : vector<16x64xf32> to vector<16x32xf32>
    %248 = vector.extract_strided_slice %246 {offsets = [0, 32], sizes = [16, 32], strides = [1, 1]} : vector<16x64xf32> to vector<16x32xf32>
    %249 = arith.mulf %247, %248 : vector<16x32xf32>
    %250 = arith.addf %249, %247 : vector<16x32xf32>
    %251 = arith.addf %250, %248 : vector<16x32xf32>
    %cst_100 = arith.constant dense<0xFF800000> : vector<16xf32>
    %252 = vector.multi_reduction <maximumf>, %247, %cst_100 [1] : vector<16x32xf32> to vector<16xf32>
    %253 = vector.shape_cast %252 : vector<16xf32> to vector<16x1xf32>
    %254 = vector.broadcast %253 : vector<16x1xf32> to vector<16x32xf32>
    %255 = arith.subf %247, %254 : vector<16x32xf32>
    %256 = math.exp %255 : vector<16x32xf32>
    %cst_101 = arith.constant dense<0.000000e+00> : vector<16xf32>
    %257 = vector.multi_reduction <add>, %256, %cst_101 [1] : vector<16x32xf32> to vector<16xf32>
    %258 = vector.shape_cast %257 : vector<16xf32> to vector<16x1xf32>
    %259 = tpu.reciprocal %258 {approx = true} : vector<16x1xf32> -> vector<16x1xf32>
    %260 = vector.broadcast %259 : vector<16x1xf32> to vector<16x32xf32>
    %261 = arith.mulf %256, %260 : vector<16x32xf32>
    %262 = arith.mulf %251, %261 : vector<16x32xf32>
    %cst_102 = arith.constant dense<0xFF800000> : vector<16xf32>
    %263 = vector.multi_reduction <maximumf>, %248, %cst_102 [1] : vector<16x32xf32> to vector<16xf32>
    %264 = vector.shape_cast %263 : vector<16xf32> to vector<16x1xf32>
    %265 = vector.broadcast %264 : vector<16x1xf32> to vector<16x32xf32>
    %266 = arith.subf %248, %265 : vector<16x32xf32>
    %267 = math.exp %266 : vector<16x32xf32>
    %cst_103 = arith.constant dense<0.000000e+00> : vector<16xf32>
    %268 = vector.multi_reduction <add>, %267, %cst_103 [1] : vector<16x32xf32> to vector<16xf32>
    %269 = vector.shape_cast %268 : vector<16xf32> to vector<16x1xf32>
    %270 = tpu.reciprocal %269 {approx = true} : vector<16x1xf32> -> vector<16x1xf32>
    %271 = vector.broadcast %270 : vector<16x1xf32> to vector<16x32xf32>
    %272 = arith.mulf %267, %271 : vector<16x32xf32>
    %273 = arith.mulf %251, %272 : vector<16x32xf32>
    %274 = tpu.concatenate %262, %247, %273, %248 in 1 : vector<16x32xf32>, vector<16x32xf32>, vector<16x32xf32>, vector<16x32xf32> -> vector<16x128xf32>
    %c0_104 = arith.constant 0 : index
    %c0_105 = arith.constant 0 : index
    %275 = vector.load %arg8[%c0_104, %c0_105] : memref<16x128xf32, #tpu.memory_space<vmem>>, vector<16x128xf32>
    tpu.vector_store %arg8[%c0_104, %c0_105], %274 {strides = array<i32>} : memref<16x128xf32, #tpu.memory_space<vmem>>, vector<16x128xf32>,
    return
  }
}

</mosaic_0001>

<bundles_post_ra>
// kernel: mutualistic_forward.1
= control target key start
LH: loop header
LB: loop body
LE: loop exit
PB: predicated region body
PF: predicated region fallthrough
CT: control target
= control target key end

     0   :  { %s2893_s0 = inlined_call_operand.vmem [shape: f32[16,32], index: 0, kind: input, shape index: {}]   ;;  %s2894_s1 = inlined_call_operand.vmem [shape: f32[16,32], index: 1, kind: input, shape index: {}]   ;;  %s2895_s2 = inlined_call_operand.vmem [shape: f32[16,32], index: 2, kind: input, shape index: {}]   ;;  %s2896_s3 = inlined_call_operand.vmem [shape: f32[16,512], index: 3, kind: input, shape index: {}]   ;;  %s2897_s4 = inlined_call_operand.vmem [shape: bf16[128,256], index: 4, kind: input, shape index: {}]   ;;  %s2898_s5 = inlined_call_operand.vmem [shape: bf16[2,128,256], index: 5, kind: input, shape index: {}]   ;;  %s2899_s6 = inlined_call_operand.vmem [shape: bf16[2,256,128], index: 6, kind: input, shape index: {}]   ;;  %s2900_s7 = inlined_call_operand.vmem [shape: bf16[256,64], index: 7, kind: input, shape index: {}]   ;;  %s2901_s8 = inlined_call_operand.vmem [shape: f32[16,128], index: 8, kind: output, shape index: {}]  }
   0x1   :  { %v2242_v0 = vld [vmem:[%s2898_s5] sm:$0xff]  ;;  %v2247_v1 = vld [vmem:[%s2898_s5 + $0x8] sm:$0xff]  ;;  %v2252_v2 = vld [vmem:[%s2898_s5 + $0x10] sm:$0xff] }
   0x2   :  { %v2257_v3 = vld [vmem:[%s2898_s5 + $0x18] sm:$0xff]  ;;  %v2262_v4 = vld [vmem:[%s2898_s5 + $0x20] sm:$0xff]  ;;  %v2267_v5 = vld [vmem:[%s2898_s5 + $0x28] sm:$0xff] }
   0x3   :  { %v2272_v6 = vld [vmem:[%s2898_s5 + $0x30] sm:$0xff]  ;;  %v2277_v7 = vld [vmem:[%s2898_s5 + $0x38] sm:$0xff]  ;;  %v2282_v8 = vld [vmem:[%s2898_s5 + $0x40] sm:$0xff] }
   0x4   :  { %v2287_v9 = vld [vmem:[%s2898_s5 + $0x48] sm:$0xff]  ;;  %v2292_v10 = vld [vmem:[%s2898_s5 + $0x50] sm:$0xff]  ;;  %v2297_v11 = vld [vmem:[%s2898_s5 + $0x58] sm:$0xff] }
   0x5   :  { %v2302_v12 = vld [vmem:[%s2898_s5 + $0x60] sm:$0xff]  ;;  %v2307_v13 = vld [vmem:[%s2898_s5 + $0x68] sm:$0xff]  ;;  %v2312_v14 = vld [vmem:[%s2898_s5 + $0x70] sm:$0xff] }
   0x6   :  { %v2317_v15 = vld [vmem:[%s2898_s5 + $0x78] sm:$0xff]  ;;  %v2322_v16 = vld [vmem:[%s2898_s5 + $0x80] sm:$0xff]  ;;  %v2327_v17 = vld [vmem:[%s2898_s5 + $0x88] sm:$0xff] }
   0x7   :  { %2905 = vst [vmem:[#allocation12_spill] sm:$0xff] %v2322_v16  ;;  %v2332_v18 = vld [vmem:[%s2898_s5 + $0x90] sm:$0xff]  ;;  %v2337_v19 = vld [vmem:[%s2898_s5 + $0x98] sm:$0xff]  ;;  %v2342_v20 = vld [vmem:[%s2898_s5 + $0xa0] sm:$0xff] }
   0x8   :  { %v2347_v21 = vld [vmem:[%s2898_s5 + $0xa8] sm:$0xff]  ;;  %v2352_v22 = vld [vmem:[%s2898_s5 + $0xb0] sm:$0xff]  ;;  %v2357_v23 = vld [vmem:[%s2898_s5 + $0xb8] sm:$0xff] }
   0x9   :  { %v2362_v24 = vld [vmem:[%s2898_s5 + $0xc0] sm:$0xff]  ;;  %v2367_v25 = vld [vmem:[%s2898_s5 + $0xc8] sm:$0xff]  ;;  %v2372_v26 = vld [vmem:[%s2898_s5 + $0xd0] sm:$0xff] }
   0xa   :  { %v2377_v27 = vld [vmem:[%s2898_s5 + $0xd8] sm:$0xff]  ;;  %v2382_v28 = vld [vmem:[%s2898_s5 + $0xe0] sm:$0xff]  ;;  %v2387_v29 = vld [vmem:[%s2898_s5 + $0xe8] sm:$0xff] }
   0xb   :  { %v2392_v30 = vld [vmem:[%s2898_s5 + $0xf0] sm:$0xff]  ;;  %v2397_v31 = vld [vmem:[%s2898_s5 + $0xf8] sm:$0xff] }
   0xc   :  { %128 = vsyncadd [#allocation5], 4096  ;;  %v163_v32 = vld [vmem:[%s2899_s6] sm:$0xff]  ;;  %v165_v33 = vld [vmem:[%s2899_s6 + $0x8] sm:$0xff] }
   0xd   :  { %164 = vst [vmem:[#allocation3] sm:$0xff] %v163_v32  ;;  %166 = vst [vmem:[#allocation3 + $0x8] sm:$0xff] %v165_v33  ;;  %v167_v34 = vld [vmem:[%s2899_s6 + $0x10] sm:$0xff]  ;;  %v169_v35 = vld [vmem:[%s2899_s6 + $0x18] sm:$0xff] }
   0xe   :  { %v171_v36 = vld [vmem:[%s2899_s6 + $0x20] sm:$0xff]  ;;  %168 = vst [vmem:[#allocation3 + $0x10] sm:$0xff] %v167_v34  ;;  %170 = vst [vmem:[#allocation3 + $0x18] sm:$0xff] %v169_v35  ;;  %v173_v37 = vld [vmem:[%s2899_s6 + $0x28] sm:$0xff] }
   0xf   :  { %172 = vst [vmem:[#allocation3 + $0x20] sm:$0xff] %v171_v36  ;;  %v175_v38 = vld [vmem:[%s2899_s6 + $0x30] sm:$0xff]  ;;  %v177_v39 = vld [vmem:[%s2899_s6 + $0x38] sm:$0xff]  ;;  %174 = vst [vmem:[#allocation3 + $0x28] sm:$0xff] %v173_v37 }
  0x10   :  { %176 = vst [vmem:[#allocation3 + $0x30] sm:$0xff] %v175_v38  ;;  %178 = vst [vmem:[#allocation3 + $0x38] sm:$0xff] %v177_v39  ;;  %v179_v40 = vld [vmem:[%s2899_s6 + $0x40] sm:$0xff]  ;;  %v181_v41 = vld [vmem:[%s2899_s6 + $0x48] sm:$0xff] }
  0x11   :  { %v183_v42 = vld [vmem:[%s2899_s6 + $0x50] sm:$0xff]  ;;  %180 = vst [vmem:[#allocation3 + $0x40] sm:$0xff] %v179_v40  ;;  %182 = vst [vmem:[#allocation3 + $0x48] sm:$0xff] %v181_v41  ;;  %v185_v43 = vld [vmem:[%s2899_s6 + $0x58] sm:$0xff] }
  0x12   :  { %184 = vst [vmem:[#allocation3 + $0x50] sm:$0xff] %v183_v42  ;;  %v187_v44 = vld [vmem:[%s2899_s6 + $0x60] sm:$0xff]  ;;  %v189_v45 = vld [vmem:[%s2899_s6 + $0x68] sm:$0xff]  ;;  %186 = vst [vmem:[#allocation3 + $0x58] sm:$0xff] %v185_v43 }
  0x13   :  { %188 = vst [vmem:[#allocation3 + $0x60] sm:$0xff] %v187_v44  ;;  %190 = vst [vmem:[#allocation3 + $0x68] sm:$0xff] %v189_v45  ;;  %v191_v46 = vld [vmem:[%s2899_s6 + $0x70] sm:$0xff]  ;;  %v193_v47 = vld [vmem:[%s2899_s6 + $0x78] sm:$0xff] }
  0x14   :  { %v195_v48 = vld [vmem:[%s2899_s6 + $0x80] sm:$0xff]  ;;  %192 = vst [vmem:[#allocation3 + $0x70] sm:$0xff] %v191_v46  ;;  %194 = vst [vmem:[#allocation3 + $0x78] sm:$0xff] %v193_v47  ;;  %v197_v49 = vld [vmem:[%s2899_s6 + $0x88] sm:$0xff] }
  0x15   :  { %196 = vst [vmem:[#allocation3 + $0x80] sm:$0xff] %v195_v48  ;;  %v199_v50 = vld [vmem:[%s2899_s6 + $0x90] sm:$0xff]  ;;  %v201_v51 = vld [vmem:[%s2899_s6 + $0x98] sm:$0xff]  ;;  %198 = vst [vmem:[#allocation3 + $0x88] sm:$0xff] %v197_v49 }
  0x16   :  { %200 = vst [vmem:[#allocation3 + $0x90] sm:$0xff] %v199_v50  ;;  %202 = vst [vmem:[#allocation3 + $0x98] sm:$0xff] %v201_v51  ;;  %v203_v52 = vld [vmem:[%s2899_s6 + $0xa0] sm:$0xff]  ;;  %v205_v53 = vld [vmem:[%s2899_s6 + $0xa8] sm:$0xff] }
  0x17   :  { %v207_v54 = vld [vmem:[%s2899_s6 + $0xb0] sm:$0xff]  ;;  %204 = vst [vmem:[#allocation3 + $0xa0] sm:$0xff] %v203_v52  ;;  %206 = vst [vmem:[#allocation3 + $0xa8] sm:$0xff] %v205_v53  ;;  %v209_v55 = vld [vmem:[%s2899_s6 + $0xb8] sm:$0xff] }
  0x18   :  { %208 = vst [vmem:[#allocation3 + $0xb0] sm:$0xff] %v207_v54  ;;  %v211_v56 = vld [vmem:[%s2899_s6 + $0xc0] sm:$0xff]  ;;  %v213_v57 = vld [vmem:[%s2899_s6 + $0xc8] sm:$0xff]  ;;  %210 = vst [vmem:[#allocation3 + $0xb8] sm:$0xff] %v209_v55 }
  0x19   :  { %212 = vst [vmem:[#allocation3 + $0xc0] sm:$0xff] %v211_v56  ;;  %214 = vst [vmem:[#allocation3 + $0xc8] sm:$0xff] %v213_v57  ;;  %v215_v58 = vld [vmem:[%s2899_s6 + $0xd0] sm:$0xff]  ;;  %v217_v59 = vld [vmem:[%s2899_s6 + $0xd8] sm:$0xff] }
  0x1a   :  { %v219_v60 = vld [vmem:[%s2899_s6 + $0xe0] sm:$0xff]  ;;  %216 = vst [vmem:[#allocation3 + $0xd0] sm:$0xff] %v215_v58  ;;  %218 = vst [vmem:[#allocation3 + $0xd8] sm:$0xff] %v217_v59  ;;  %v221_v61 = vld [vmem:[%s2899_s6 + $0xe8] sm:$0xff] }
  0x1b   :  { %220 = vst [vmem:[#allocation3 + $0xe0] sm:$0xff] %v219_v60  ;;  %v223_v62 = vld [vmem:[%s2899_s6 + $0xf0] sm:$0xff]  ;;  %v225_v63 = vld [vmem:[%s2899_s6 + $0xf8] sm:$0xff]  ;;  %222 = vst [vmem:[#allocation3 + $0xe8] sm:$0xff] %v221_v61 }
  0x1c   :  { %224 = vst [vmem:[#allocation3 + $0xf0] sm:$0xff] %v223_v62  ;;  %226 = vst [vmem:[#allocation3 + $0xf8] sm:$0xff] %v225_v63 }
  0x1d   :  { %234 = vsyncadd [#allocation5 + $0x1], 4096  ;;  %v269_v32 = vld [vmem:[%s2900_s7] sm:$0xff]  ;;  %v271_v33 = vld [vmem:[%s2900_s7 + $0x8] sm:$0xff]  ;;  %s2190_s9 = smov 64   ;;  %s2191_s10 = smov 32  }
  0x1e   :  { %270 = vst [vmem:[#allocation4] sm:$0xff] %v269_v32  ;;  %272 = vst [vmem:[#allocation4 + $0x8] sm:$0xff] %v271_v33  ;;  %v273_v34 = vld [vmem:[%s2900_s7 + $0x10] sm:$0xff]  ;;  %v275_v35 = vld [vmem:[%s2900_s7 + $0x18] sm:$0xff] }
  0x1f   :  { %v277_v36 = vld [vmem:[%s2900_s7 + $0x20] sm:$0xff]  ;;  %274 = vst [vmem:[#allocation4 + $0x10] sm:$0xff] %v273_v34  ;;  %276 = vst [vmem:[#allocation4 + $0x18] sm:$0xff] %v275_v35  ;;  %v279_v37 = vld [vmem:[%s2900_s7 + $0x28] sm:$0xff] }
  0x20   :  { %278 = vst [vmem:[#allocation4 + $0x20] sm:$0xff] %v277_v36  ;;  %v281_v38 = vld [vmem:[%s2900_s7 + $0x30] sm:$0xff]  ;;  %v283_v39 = vld [vmem:[%s2900_s7 + $0x38] sm:$0xff]  ;;  %280 = vst [vmem:[#allocation4 + $0x28] sm:$0xff] %v279_v37 }
  0x21   :  { %282 = vst [vmem:[#allocation4 + $0x30] sm:$0xff] %v281_v38  ;;  %284 = vst [vmem:[#allocation4 + $0x38] sm:$0xff] %v283_v39  ;;  %v285_v40 = vld [vmem:[%s2900_s7 + $0x40] sm:$0xff]  ;;  %v287_v41 = vld [vmem:[%s2900_s7 + $0x48] sm:$0xff] }
  0x22   :  { %v289_v42 = vld [vmem:[%s2900_s7 + $0x50] sm:$0xff]  ;;  %286 = vst [vmem:[#allocation4 + $0x40] sm:$0xff] %v285_v40  ;;  %288 = vst [vmem:[#allocation4 + $0x48] sm:$0xff] %v287_v41  ;;  %v291_v43 = vld [vmem:[%s2900_s7 + $0x58] sm:$0xff] }
  0x23   :  { %290 = vst [vmem:[#allocation4 + $0x50] sm:$0xff] %v289_v42  ;;  %v293_v44 = vld [vmem:[%s2900_s7 + $0x60] sm:$0xff]  ;;  %v295_v45 = vld [vmem:[%s2900_s7 + $0x68] sm:$0xff]  ;;  %292 = vst [vmem:[#allocation4 + $0x58] sm:$0xff] %v291_v43 }
  0x24   :  { %294 = vst [vmem:[#allocation4 + $0x60] sm:$0xff] %v293_v44  ;;  %296 = vst [vmem:[#allocation4 + $0x68] sm:$0xff] %v295_v45  ;;  %v297_v46 = vld [vmem:[%s2900_s7 + $0x70] sm:$0xff]  ;;  %v299_v47 = vld [vmem:[%s2900_s7 + $0x78] sm:$0xff] }
  0x25   :  { %298 = vst [vmem:[#allocation4 + $0x70] sm:$0xff] %v297_v46  ;;  %300 = vst [vmem:[#allocation4 + $0x78] sm:$0xff] %v299_v47  ;;  %v313_v48 = vld [vmem:[%s2895_s2] sm:$0xff]  ;;  %v314_v50 = vld [vmem:[%s2895_s2 + $0x8] sm:$0xff] }
  0x26   :  { %v311_v49 = vld [vmem:[%s2894_s1] sm:$0xff]  ;;  %325 = vrot.lane.b32.xlu1 %v313_v48, %s2190_s9  ;;  %v312_v51 = vld [vmem:[%s2894_s1 + $0x8] sm:$0xff] }
  0x27   :  { %317 = vrot.lane.b32.xlu0 %v311_v49, %s2191_s10 }
  0x28   :  { %308 = vsyncadd [#allocation5 + $0x2], 2048  ;;  %s2192_s13 = smov 96   ;;  %v2076_v52 = vld [vmem:[%s2897_s4 + $0x74] ss:$8 sps:$4 sm:$0xff]   ;;  %v2902_v36 = vmov 0  }
  0x29   :  { %v2078_v53 = vld [vmem:[%s2897_s4 + $0x70] ss:$8 sps:$4 sm:$0xff]   ;;  %490 = vmatprep.subr.bf16.mxu0 %v2076_v52  ;;  %v2079_v54 = vld [vmem:[%s2897_s4 + $0x64] ss:$8 sps:$4 sm:$0xff]   ;;  %v2081_v55 = vld [vmem:[%s2897_s4 + $0x60] ss:$8 sps:$4 sm:$0xff]   ;;  %522 = vmatprep.mubr.bf16.mxu0 %v2902_v36 }
  0x2a   :  { %327 = vrot.lane.b32.xlu1 %v314_v50, %s2190_s9  ;;  %491 = vmatpush1.bf16.msra.mxu0 %v2078_v53  ;;  %v2082_v56 = vld [vmem:[%s2897_s4 + $0x54] ss:$8 sps:$4 sm:$0xff]   ;;  %v2084_v57 = vld [vmem:[%s2897_s4 + $0x50] ss:$8 sps:$4 sm:$0xff]   ;;  %v2085_v58 = vld [vmem:[%s2897_s4 + $0x44] ss:$8 sps:$4 sm:$0xff]  }
  0x2b   :  { %319 = vrot.lane.b32.xlu0 %v312_v51, %s2191_s10  ;;  %492 = vmatprep.subr.bf16.mxu0 %v2079_v54  ;;  %v2087_v59 = vld [vmem:[%s2897_s4 + $0x40] ss:$8 sps:$4 sm:$0xff]   ;;  %v2088_v60 = vld [vmem:[%s2897_s4 + $0x34] ss:$8 sps:$4 sm:$0xff]   ;;  %v2090_v61 = vld [vmem:[%s2897_s4 + $0x30] ss:$8 sps:$4 sm:$0xff]  }
  0x2c   :  { %v2091_v62 = vld [vmem:[%s2897_s4 + $0x24] ss:$8 sps:$4 sm:$0xff]   ;;  %v2093_v63 = vld [vmem:[%s2897_s4 + $0x20] ss:$8 sps:$4 sm:$0xff]   ;;  %v2094_v32 = vld [vmem:[%s2897_s4 + $0x14] ss:$8 sps:$4 sm:$0xff]  }
  0x2d   :  { %v2096_v33 = vld [vmem:[%s2897_s4 + $0x10] ss:$8 sps:$4 sm:$0xff]   ;;  %v2097_v34 = vld [vmem:[%s2897_s4 + $0x4] ss:$8 sps:$4 sm:$0xff]   ;;  %v2099_v35 = vld [vmem:[%s2897_s4] ss:$8 sps:$4 sm:$0xff]  }
  0x2e   :  { %333 = vrot.lane.b32.xlu1 %v312_v51, %s2192_s13  ;;  %493 = vmatpush1.bf16.msra.mxu0 %v2081_v55  ;;  %vm337_vm0 = vcmask 261120   ;;  %v309_v39 = vld [vmem:[%s2893_s0] sm:$0xff]  ;;  %v310_v40 = vld [vmem:[%s2893_s0 + $0x8] sm:$0xff]  ;;  %vm340_vm1 = vcmask 523264   ;;  %vm343_vm2 = vcmask 785408  }
  0x2f   :  { %331 = vrot.lane.b32.xlu0 %v311_v49, %s2192_s13  ;;  %494 = vmatprep.subr.bf16.mxu0 %v2082_v56 }
  0x32   :  { %495 = vmatpush1.bf16.msra.mxu0 %v2084_v57 }
  0x33   :  { %496 = vmatprep.subr.bf16.mxu0 %v2085_v58 }
  0x36   :  { %497 = vmatpush1.bf16.msra.mxu0 %v2087_v59 }
  0x37   :  { %498 = vmatprep.subr.bf16.mxu0 %v2088_v60 }
  0x3a   :  { %499 = vmatpush1.bf16.msra.mxu0 %v2090_v61 }
  0x3b   :  { %500 = vmatprep.subr.bf16.mxu0 %v2091_v62 }
  0x3e   :  { %501 = vmatpush1.bf16.msra.mxu0 %v2093_v63 }
  0x3f   :  { %502 = vmatprep.subr.bf16.mxu0 %v2094_v32 }
  0x42   :  { %503 = vmatpush1.bf16.msra.mxu0 %v2096_v33 }
  0x43   :  { %504 = vmatprep.subr.bf16.mxu0 %v2097_v34 }
  0x46   :  { %505 = vmatpush1.bf16.msra.mxu0 %v2099_v35 }
  0x98   :  { %v326_v37 = vpop.permute.xlu1 %325 }
  0x99   :  { %v318_v38 = vpop.permute.xlu0 %317 }
  0x9a   :  { %v338_v43 = vsel %vm337_vm0, %v309_v39, %v318_v38 }
  0x9b   :  { %v341_v48 = vsel %vm340_vm1, %v338_v43, %v326_v37 }
  0x9c   :  { %v328_v41 = vpop.permute.xlu1 %327 }
  0x9d   :  { %v320_v42 = vpop.permute.xlu0 %319 }
  0x9e   :  { %v339_v44 = vsel %vm337_vm0, %v310_v40, %v320_v42 }
  0x9f   :  { %v342_v46 = vsel %vm340_vm1, %v339_v44, %v328_v41 }
  0xa0   :  { %v334_v45 = vpop.permute.xlu1 %333 }
  0xa1   :  { %v332_v47 = vpop.permute.xlu0 %331  ;;  %v345_v49 = vsel %vm343_vm2, %v342_v46, %v334_v45  ;;  %v374_v45 = vld [vmem:[%s2896_s3] ss:$0 sm:$0xff] }
  0xa2   :  { %v344_v50 = vsel %vm343_vm2, %v341_v48, %v332_v47  ;;  %v356_v51 = vmul.f32 %v345_v49, %v345_v49  ;;  %v377_v48 = vld [vmem:[%s2896_s3 + $0x1] ss:$0 sm:$0xff] }
  0xa3   :  { %v346_v52 = vadd.f32 %v345_v49, %v344_v50  ;;  %v355_v53 = vmul.f32 %v344_v50, %v344_v50 }
  0xa5   :  { %v347_v54 = vrot.slane %v346_v52, 4  ;;  %v357_v55 = vadd.f32 %v356_v51, %v355_v53 }
  0xa7   :  { %v348_v56 = vadd.f32 %v347_v54, %v346_v52  ;;  %v358_v57 = vrot.slane %v357_v55, 4 }
  0xa9   :  { %v349_v58 = vrot.slane %v348_v56, 2  ;;  %v359_v59 = vadd.f32 %v358_v57, %v357_v55  ;;  %v1898_v57 = vld [vmem:[%s2896_s3 + $0x2] ss:$8 sm:$0x3] }
  0xab   :  { %v350_v60 = vadd.f32 %v349_v58, %v348_v56  ;;  %v360_v61 = vrot.slane %v359_v59, 2  ;;  %v400_v56 = vlaneseq }
  0xad   :  { %v351_v62 = vrot.slane %v350_v60, 1  ;;  %v361_v63 = vadd.f32 %v360_v61, %v359_v59 }
  0xaf   :  { %v352_v32 = vadd.f32 %v351_v62, %v350_v60  ;;  %v362_v33 = vrot.slane %v361_v63, 1 }
  0xb1   :  { %v354_v34 = vmul.f32 0.0625, %v352_v32  ;;  %v363_v35 = vadd.f32 %v362_v33, %v361_v63 }
  0xb3   :  { %v364_v37 = vmul.f32 0.0625, %v363_v35  ;;  %v365_v38 = vmul.f32 %v354_v34, %v354_v34  ;;  %v368_v42 = vsub.f32 %v344_v50, %v354_v34  ;;  %v369_v43 = vsub.f32 %v345_v49, %v354_v34 }
  0xb4   :  { %v401_v50 = vshrl.u32 %v400_v56, 7 }
  0xb5   :  { %v366_v39 = vsub.f32 %v364_v37, %v365_v38 }
  0xb6   :  { %v2628_v49 = vsub.s32 0, %v401_v50  ;;  %v2633_v58 = vsub.s32 1, %v401_v50 }
  0xb7   :  { %v367_v40 = vmax.f32 %v366_v39, 0.0 }
  0xb8   :  { %v403_v59 = vrot.slane %v1898_v57, %v2628_v49  ;;  %v407_v61 = vrot.slane %v1898_v57, %v2633_v58 }
  0xb9   :  { %v370_v41 = vadd.f32 1e-05, %v367_v40 }
  0xbb   :  { %2100 = vrsqrt.f32 %v370_v41 }
  0xc8   :  { %v2101_v44 = vpop.eup %2100 }
  0xc9   :  { %v372_v46 = vmul.f32 %v2101_v44, %v368_v42  ;;  %v373_v47 = vmul.f32 %v2101_v44, %v369_v43 }
  0xcb   :  { %v375_v51 = vmul.f32 %v374_v45, %v372_v46  ;;  %v376_v52 = vmul.f32 %v374_v45, %v373_v47 }
  0xcd   :  { %v378_v53 = vadd.f32 %v377_v48, %v375_v51  ;;  %v379_v54 = vadd.f32 %v377_v48, %v376_v52 }
  0xcf   :  { %v396_v55 = vpack.c.bf16 %v379_v54, %v378_v53 }
  0xd1   :  { %523 = vmatmul.mubr.bf16.vlgmr.msra.gmra.mxu0 %v396_v55 }
 0x191   :  { %v524_v60 = vpop.f32.mrf.mxu0 }
 0x192   :  { %v525_v63 = vadd.f32 %v524_v60, %v403_v59 }
 0x193   :  { %v526_v62 = vpop.f32.mrf.mxu0 }
 0x194   :  { %v2637_v32 = vadd.f32 %v526_v62, %v407_v61  ;;  %v549_v37 = vmul.f32 %v525_v63, %v525_v63 }
 0x195   :  { %v528_v33 = vpop.f32.mrf.mxu0 }
 0x196   :  { %v529_v34 = vadd.f32 %v528_v33, %v403_v59  ;;  %v550_v41 = vmul.f32 %v2637_v32, %v2637_v32 }
 0x197   :  { %v530_v35 = vpop.f32.mrf.mxu0 }
 0x198   :  { %v533_v38 = vadd.f32 %v529_v34, %v525_v63  ;;  %v551_v39 = vmul.f32 %v529_v34, %v529_v34  ;;  %v531_v40 = vadd.f32 %v530_v35, %v407_v61 }
 0x19a   :  { %v534_v42 = vrot.slane %v533_v38, 4  ;;  %v553_v43 = vadd.f32 %v551_v39, %v549_v37  ;;  %v540_v44 = vadd.f32 %v531_v40, %v2637_v32  ;;  %v552_v45 = vmul.f32 %v531_v40, %v531_v40 }
 0x19c   :  { %v535_v46 = vadd.f32 %v534_v42, %v533_v38  ;;  %v554_v47 = vrot.slane %v553_v43, 4  ;;  %v541_v48 = vrot.slane %v540_v44, 4  ;;  %v560_v51 = vadd.f32 %v552_v45, %v550_v41 }
 0x19e   :  { %v536_v52 = vrot.slane %v535_v46, 2  ;;  %v555_v53 = vadd.f32 %v554_v47, %v553_v43  ;;  %v542_v54 = vadd.f32 %v541_v48, %v540_v44  ;;  %v561_v55 = vrot.slane %v560_v51, 4 }
 0x1a0   :  { %v537_v56 = vadd.f32 %v536_v52, %v535_v46  ;;  %v556_v50 = vrot.slane %v555_v53, 2  ;;  %v543_v57 = vrot.slane %v542_v54, 2  ;;  %v562_v59 = vadd.f32 %v561_v55, %v560_v51 }
 0x1a2   :  { %v538_v60 = vrot.slane %v537_v56, 1  ;;  %v557_v61 = vadd.f32 %v556_v50, %v555_v53  ;;  %v544_v62 = vadd.f32 %v543_v57, %v542_v54  ;;  %v563_v33 = vrot.slane %v562_v59, 2  ;;  %v1915_v50 = vld [vmem:[%s2896_s3 + $0x3] ss:$8 sm:$0x3] }
 0x1a3   :  { %v1916_v57 = vld [vmem:[%s2896_s3 + $0x4] ss:$8 sm:$0x3] }
 0x1a4   :  { %v539_v35 = vadd.f32 %v538_v60, %v537_v56  ;;  %v558_v37 = vrot.slane %v557_v61, 1  ;;  %v545_v39 = vrot.slane %v544_v62, 1  ;;  %v564_v36 = vadd.f32 %v563_v33, %v562_v59 }
 0x1a5   :  { %v593_v59 = vrot.slane %v1915_v50, %v2628_v49 }
 0x1a6   :  { %v547_v38 = vmul.f32 0.0625, %v539_v35  ;;  %v559_v42 = vadd.f32 %v558_v37, %v557_v61  ;;  %v546_v16 = vadd.f32 %v545_v39, %v544_v62  ;;  %v565_v41 = vrot.slane %v564_v36, 1 }
 0x1a7   :  { %v610_v61 = vrot.slane %v1916_v57, %v2628_v49  ;;  %v597_v39 = vrot.slane %v1915_v50, %v2633_v58 }
 0x1a8   :  { %v567_v45 = vmul.f32 0.0625, %v559_v42  ;;  %v569_v43 = vmul.f32 %v547_v38, %v547_v38  ;;  %v548_v44 = vmul.f32 0.0625, %v546_v16  ;;  %v566_v47 = vadd.f32 %v565_v41, %v564_v36 }
 0x1a9   :  { %v575_v16 = vsub.f32 %v525_v63, %v547_v38  ;;  %v577_v36 = vsub.f32 %v529_v34, %v547_v38 }
 0x1aa   :  { %v571_v46 = vsub.f32 %v567_v45, %v569_v43  ;;  %v568_v48 = vmul.f32 0.0625, %v566_v47  ;;  %v570_v52 = vmul.f32 %v548_v44, %v548_v44  ;;  %v576_v35 = vsub.f32 %v2637_v32, %v548_v44 }
 0x1ab   :  { %v578_v37 = vsub.f32 %v531_v40, %v548_v44  ;;  %v614_v43 = vrot.slane %v1916_v57, %v2633_v58  ;;  %v1933_v32 = vcombine.high %v2312_v14, %v2317_v15  ;;  %v1950_v40 = vcombine.high %v2392_v30, %v2397_v31 }
 0x1ac   :  { %v573_v51 = vmax.f32 %v571_v46, 0.0  ;;  %v572_v55 = vsub.f32 %v568_v48, %v570_v52  ;;  %v1932_v44 = vcombine.low %v2312_v14, %v2317_v15 }
 0x1ae   :  { %v579_v53 = vadd.f32 1e-05, %v573_v51  ;;  %v574_v54 = vmax.f32 %v572_v55, 0.0  ;;  %v1949_v55 = vcombine.low %v2392_v30, %v2397_v31 }
 0x1b0   :  { %2102 = vrsqrt.f32 %v579_v53  ;;  %v580_v56 = vadd.f32 1e-05, %v574_v54  ;;  %v2906_v53 = vmov 0  }
 0x1b1   :  { %768 = vmatprep.mubr.bf16.mxu1 %v2906_v53 }
 0x1b2   :  { %2104 = vrsqrt.f32 %v580_v56 }
 0x1bd   :  { %v2103_v60 = vpop.eup %2102 }
 0x1be   :  { %v583_v62 = vmul.f32 %v2103_v60, %v575_v16  ;;  %v585_v33 = vmul.f32 %v2103_v60, %v577_v36 }
 0x1bf   :  { %v2105_v42 = vpop.eup %2104 }
 0x1c0   :  { %v600_v41 = vmul.f32 %v593_v59, %v583_v62  ;;  %v602_v45 = vmul.f32 %v593_v59, %v585_v33  ;;  %v584_v47 = vmul.f32 %v2105_v42, %v576_v35  ;;  %v586_v63 = vmul.f32 %v2105_v42, %v578_v37 }
 0x1c2   :  { %v2653_v34 = vadd.f32 %v610_v61, %v600_v41  ;;  %v2655_v38 = vadd.f32 %v610_v61, %v602_v45  ;;  %v601_v46 = vmul.f32 %v597_v39, %v584_v47  ;;  %v603_v48 = vmul.f32 %v597_v39, %v586_v63 }
 0x1c4   :  { %v2657_v52 = vadd.f32 %v614_v43, %v601_v46  ;;  %v2659_v51 = vadd.f32 %v614_v43, %v603_v48 }
 0x1c5   :  { %2184 = dma.done.wait [#allocation5], 4096 }
 0x1c6   :  { %2185 = vsyncadd [#allocation5], 4294963200  ;;  %v1931_v54 = vcombine.high %v2302_v12, %v2307_v13  ;;  %v1948_v56 = vcombine.high %v2382_v28, %v2387_v29  ;;  %922 = vmatprep.mubr.bf16.mxu0 %v2906_v53  ;;  %736 = vmatprep.subr.bf16.mxu1 %v1933_v32  ;;  %v1930_v14 = vcombine.low %v2302_v12, %v2307_v13 }
 0x1c7   :  { %890 = vmatprep.subr.bf16.mxu0 %v1950_v40  ;;  %737 = vmatpush1.bf16.msra.mxu1 %v1932_v44  ;;  %v1947_v15 = vcombine.low %v2382_v28, %v2387_v29  ;;  %v1929_v30 = vcombine.high %v2292_v10, %v2297_v11  ;;  %v1946_v31 = vcombine.high %v2372_v26, %v2377_v27 }
 0x1c8   :  { %891 = vmatpush1.bf16.msra.mxu0 %v1949_v55  ;;  %738 = vmatprep.subr.bf16.mxu1 %v1931_v54  ;;  %v1928_v50 = vcombine.low %v2292_v10, %v2297_v11  ;;  %v1945_v57 = vcombine.low %v2372_v26, %v2377_v27  ;;  %v1927_v12 = vcombine.high %v2282_v8, %v2287_v9 }
 0x1c9   :  { %892 = vmatprep.subr.bf16.mxu0 %v1948_v56  ;;  %v1944_v13 = vcombine.high %v2362_v24, %v2367_v25  ;;  %v1926_v28 = vcombine.low %v2282_v8, %v2287_v9  ;;  %v1943_v29 = vcombine.low %v2362_v24, %v2367_v25  ;;  %v1925_v10 = vcombine.high %v2272_v6, %v2277_v7 }
 0x1ca   :  { %v1942_v11 = vcombine.high %v2352_v22, %v2357_v23  ;;  %v1924_v26 = vcombine.low %v2272_v6, %v2277_v7  ;;  %v1941_v27 = vcombine.low %v2352_v22, %v2357_v23  ;;  %v1923_v8 = vcombine.high %v2262_v4, %v2267_v5 }
 0x1cb   :  { %739 = vmatpush1.bf16.msra.mxu1 %v1930_v14  ;;  %v1940_v9 = vcombine.high %v2342_v20, %v2347_v21  ;;  %v1922_v24 = vcombine.low %v2262_v4, %v2267_v5  ;;  %v1939_v25 = vcombine.low %v2342_v20, %v2347_v21  ;;  %v1921_v6 = vcombine.high %v2252_v2, %v2257_v3  ;;  %v2907_v5 = vld [vmem:[#allocation12_spill] sm:$0xff] }
 0x1cc   :  { %893 = vmatpush1.bf16.msra.mxu0 %v1947_v15  ;;  %740 = vmatprep.subr.bf16.mxu1 %v1929_v30  ;;  %v1938_v7 = vcombine.high %v2332_v18, %v2337_v19  ;;  %v1920_v22 = vcombine.low %v2252_v2, %v2257_v3  ;;  %v1937_v23 = vcombine.low %v2332_v18, %v2337_v19  ;;  %v1917_v18 = vld [vmem:[%s2896_s3 + $0x5] ss:$8 sm:$0x3] }
 0x1cd   :  { %894 = vmatprep.subr.bf16.mxu0 %v1946_v31  ;;  %v1919_v4 = vcombine.high %v2242_v0, %v2247_v1  ;;  %v1936_v20 = vcombine.high %v2907_v5, %v2327_v17  ;;  %v1918_v21 = vcombine.low %v2242_v0, %v2247_v1  ;;  %v1935_v16 = vcombine.low %v2907_v5, %v2327_v17  ;;  %v1934_v0 = vld [vmem:[%s2896_s3 + $0x15] ss:$8 sm:$0x3] }
 0x1ce   :  { %v642_v2 = vpack.c.bf16 %v2655_v38, %v2653_v34  ;;  %v796_v3 = vpack.c.bf16 %v2659_v51, %v2657_v52  ;;  %v649_v1 = vrot.slane %v1917_v18, %v2628_v49  ;;  %v803_v17 = vrot.slane %v1934_v0, %v2628_v49 }
 0x1cf   :  { %741 = vmatpush1.bf16.msra.mxu1 %v1928_v50  ;;  %v653_v59 = vrot.slane %v1917_v18, %v2633_v58  ;;  %v807_v60 = vrot.slane %v1934_v0, %v2633_v58 }
 0x1d0   :  { %895 = vmatpush1.bf16.msra.mxu0 %v1945_v57  ;;  %742 = vmatprep.subr.bf16.mxu1 %v1927_v12 }
 0x1d1   :  { %896 = vmatprep.subr.bf16.mxu0 %v1944_v13 }
 0x1d3   :  { %743 = vmatpush1.bf16.msra.mxu1 %v1926_v28 }
 0x1d4   :  { %897 = vmatpush1.bf16.msra.mxu0 %v1943_v29  ;;  %744 = vmatprep.subr.bf16.mxu1 %v1925_v10 }
 0x1d5   :  { %898 = vmatprep.subr.bf16.mxu0 %v1942_v11 }
 0x1d7   :  { %745 = vmatpush1.bf16.msra.mxu1 %v1924_v26 }
 0x1d8   :  { %899 = vmatpush1.bf16.msra.mxu0 %v1941_v27  ;;  %746 = vmatprep.subr.bf16.mxu1 %v1923_v8 }
 0x1d9   :  { %900 = vmatprep.subr.bf16.mxu0 %v1940_v9 }
 0x1db   :  { %747 = vmatpush1.bf16.msra.mxu1 %v1922_v24 }
 0x1dc   :  { %901 = vmatpush1.bf16.msra.mxu0 %v1939_v25  ;;  %748 = vmatprep.subr.bf16.mxu1 %v1921_v6 }
 0x1dd   :  { %902 = vmatprep.subr.bf16.mxu0 %v1938_v7 }
 0x1df   :  { %749 = vmatpush1.bf16.msra.mxu1 %v1920_v22 }
 0x1e0   :  { %903 = vmatpush1.bf16.msra.mxu0 %v1937_v23  ;;  %750 = vmatprep.subr.bf16.mxu1 %v1919_v4 }
 0x1e1   :  { %904 = vmatprep.subr.bf16.mxu0 %v1936_v20 }
 0x1e3   :  { %751 = vmatpush1.bf16.msra.mxu1 %v1918_v21 }
 0x1e4   :  { %905 = vmatpush1.bf16.msra.mxu0 %v1935_v16 }
 0x1e6   :  { %769 = vmatmul.mubr.bf16.vlgmr.msra.gmra.mxu1 %v642_v2 }
 0x1e7   :  { %923 = vmatmul.mubr.bf16.vlgmr.msra.gmra.mxu0 %v796_v3 }
 0x2a6   :  { %v770_v19 = vpop.f32.mrf.mxu1 }
 0x2a7   :  { %v924_v36 = vpop.f32.mrf.mxu0  ;;  %v2741_v61 = vadd.f32 %v770_v19, %v649_v1 }
 0x2a8   :  { %v2743_v62 = vadd.f32 %v924_v36, %v803_v17  ;;  %v772_v33 = vpop.f32.mrf.mxu1 }
 0x2a9   :  { %v926_v35 = vpop.f32.mrf.mxu0  ;;  %v2745_v37 = vadd.f32 %v772_v33, %v653_v59  ;;  %v949_v47 = vmul.f32 %v2741_v61, %v2741_v61 }
 0x2aa   :  { %v2747_v39 = vadd.f32 %v926_v35, %v807_v60  ;;  %v774_v42 = vpop.f32.mrf.mxu1  ;;  %v1037_v63 = vmul.f32 %v2743_v62, %v2743_v62 }
 0x2ab   :  { %v928_v41 = vpop.f32.mrf.mxu0  ;;  %v2749_v45 = vadd.f32 %v774_v42, %v649_v1  ;;  %v950_v32 = vmul.f32 %v2745_v37, %v2745_v37 }
 0x2ac   :  { %v2751_v43 = vadd.f32 %v928_v41, %v803_v17  ;;  %v776_v34 = vpop.f32.mrf.mxu1  ;;  %v1038_v40 = vmul.f32 %v2747_v39, %v2747_v39 }
 0x2ad   :  { %v930_v38 = vpop.f32.mrf.mxu0  ;;  %v933_v46 = vadd.f32 %v2749_v45, %v2741_v61  ;;  %v951_v48 = vmul.f32 %v2749_v45, %v2749_v45  ;;  %v2769_v44 = vadd.f32 %v776_v34, %v653_v59 }
 0x2ae   :  { %v1021_v52 = vadd.f32 %v2751_v43, %v2743_v62  ;;  %v1039_v51 = vmul.f32 %v2751_v43, %v2751_v43  ;;  %v2771_v55 = vadd.f32 %v930_v38, %v807_v60 }
 0x2af   :  { %v934_v53 = vrot.slane %v933_v46, 4  ;;  %v953_v54 = vadd.f32 %v951_v48, %v949_v47  ;;  %v940_v15 = vadd.f32 %v2769_v44, %v2745_v37  ;;  %v952_v30 = vmul.f32 %v2769_v44, %v2769_v44 }
 0x2b0   :  { %v1022_v56 = vrot.slane %v1021_v52, 4  ;;  %v1041_v14 = vadd.f32 %v1039_v51, %v1037_v63  ;;  %v1028_v31 = vadd.f32 %v2771_v55, %v2747_v39  ;;  %v1040_v50 = vmul.f32 %v2771_v55, %v2771_v55 }
 0x2b1   :  { %v935_v57 = vadd.f32 %v934_v53, %v933_v46  ;;  %v954_v12 = vrot.slane %v953_v54, 4  ;;  %v941_v29 = vrot.slane %v940_v15, 4  ;;  %v960_v10 = vadd.f32 %v952_v30, %v950_v32 }
 0x2b2   :  { %v1023_v13 = vadd.f32 %v1022_v56, %v1021_v52  ;;  %v1042_v28 = vrot.slane %v1041_v14, 4  ;;  %v1029_v11 = vrot.slane %v1028_v31, 4  ;;  %v1048_v26 = vadd.f32 %v1040_v50, %v1038_v40 }
 0x2b3   :  { %v936_v27 = vrot.slane %v935_v57, 2  ;;  %v955_v8 = vadd.f32 %v954_v12, %v953_v54  ;;  %v942_v25 = vadd.f32 %v941_v29, %v940_v15  ;;  %v961_v6 = vrot.slane %v960_v10, 4 }
 0x2b4   :  { %v1024_v9 = vrot.slane %v1023_v13, 2  ;;  %v1043_v24 = vadd.f32 %v1042_v28, %v1041_v14  ;;  %v1030_v7 = vadd.f32 %v1029_v11, %v1028_v31  ;;  %v1049_v22 = vrot.slane %v1048_v26, 4 }
 0x2b5   :  { %v937_v23 = vadd.f32 %v936_v27, %v935_v57  ;;  %v956_v4 = vrot.slane %v955_v8, 2  ;;  %v943_v21 = vrot.slane %v942_v25, 2  ;;  %v962_v16 = vadd.f32 %v961_v6, %v960_v10 }
 0x2b6   :  { %v1025_v5 = vadd.f32 %v1024_v9, %v1023_v13  ;;  %v1044_v20 = vrot.slane %v1043_v24, 2  ;;  %v1031_v2 = vrot.slane %v1030_v7, 2  ;;  %v1050_v3 = vadd.f32 %v1049_v22, %v1048_v26 }
 0x2b7   :  { %v938_v18 = vrot.slane %v937_v23, 1  ;;  %v957_v0 = vadd.f32 %v956_v4, %v955_v8  ;;  %v944_v19 = vadd.f32 %v943_v21, %v942_v25  ;;  %v963_v36 = vrot.slane %v962_v16, 2  ;;  %v1952_v21 = vld [vmem:[%s2896_s3 + $0x7] ss:$8 sm:$0x3] }
 0x2b8   :  { %v1026_v1 = vrot.slane %v1025_v5, 1  ;;  %v1045_v17 = vadd.f32 %v1044_v20, %v1043_v24  ;;  %v1032_v59 = vadd.f32 %v1031_v2, %v1030_v7  ;;  %v1051_v60 = vrot.slane %v1050_v3, 2  ;;  %v1953_v20 = vld [vmem:[%s2896_s3 + $0x16] ss:$8 sm:$0x3] }
 0x2b9   :  { %v939_v33 = vadd.f32 %v938_v18, %v937_v23  ;;  %v958_v35 = vrot.slane %v957_v0, 1  ;;  %v945_v47 = vrot.slane %v944_v19, 1  ;;  %v964_v63 = vadd.f32 %v963_v36, %v962_v16  ;;  %v1954_v16 = vld [vmem:[%s2896_s3 + $0x17] ss:$8 sm:$0x3] }
 0x2ba   :  { %v1027_v42 = vadd.f32 %v1026_v1, %v1025_v5  ;;  %v1046_v41 = vrot.slane %v1045_v17, 1  ;;  %v1033_v34 = vrot.slane %v1032_v59, 1  ;;  %v1052_v38 = vadd.f32 %v1051_v60, %v1050_v3  ;;  %v1951_v5 = vld [vmem:[%s2896_s3 + $0x6] ss:$8 sm:$0x3] }
 0x2bb   :  { %v947_v46 = vmul.f32 0.0625, %v939_v33  ;;  %v959_v48 = vadd.f32 %v958_v35, %v957_v0  ;;  %v946_v32 = vadd.f32 %v945_v47, %v944_v19  ;;  %v965_v40 = vrot.slane %v964_v63, 1 }
 0x2bc   :  { %v1035_v52 = vmul.f32 0.0625, %v1027_v42  ;;  %v1047_v51 = vadd.f32 %v1046_v41, %v1045_v17  ;;  %v1034_v53 = vadd.f32 %v1033_v34, %v1032_v59  ;;  %v1053_v54 = vrot.slane %v1052_v38, 1 }
 0x2bd   :  { %v967_v56 = vmul.f32 0.0625, %v959_v48  ;;  %v969_v14 = vmul.f32 %v947_v46, %v947_v46  ;;  %v948_v50 = vmul.f32 0.0625, %v946_v32  ;;  %v966_v57 = vadd.f32 %v965_v40, %v964_v63 }
 0x2be   :  { %v1055_v15 = vmul.f32 0.0625, %v1047_v51  ;;  %v1057_v30 = vmul.f32 %v1035_v52, %v1035_v52  ;;  %v1036_v12 = vmul.f32 0.0625, %v1034_v53  ;;  %v1054_v28 = vadd.f32 %v1053_v54, %v1052_v38 }
 0x2bf   :  { %v971_v31 = vsub.f32 %v967_v56, %v969_v14  ;;  %v968_v10 = vmul.f32 0.0625, %v966_v57  ;;  %v970_v11 = vmul.f32 %v948_v50, %v948_v50  ;;  %v975_v2 = vsub.f32 %v2741_v61, %v947_v46 }
 0x2c0   :  { %v1059_v13 = vsub.f32 %v1055_v15, %v1057_v30  ;;  %v1056_v27 = vmul.f32 0.0625, %v1054_v28  ;;  %v1058_v8 = vmul.f32 %v1036_v12, %v1036_v12  ;;  %v977_v3 = vsub.f32 %v2749_v45, %v947_v46 }
 0x2c1   :  { %v973_v29 = vmax.f32 %v971_v31, 0.0  ;;  %v972_v24 = vsub.f32 %v968_v10, %v970_v11  ;;  %v993_v18 = vrot.slane %v1951_v5, %v2628_v49  ;;  %v1081_v0 = vrot.slane %v1953_v20, %v2628_v49 }
 0x2c2   :  { %v1061_v26 = vmax.f32 %v1059_v13, 0.0  ;;  %v1060_v6 = vsub.f32 %v1056_v27, %v1058_v8  ;;  %v1010_v17 = vrot.slane %v1952_v21, %v2628_v49  ;;  %v1063_v19 = vsub.f32 %v2743_v62, %v1035_v52 }
 0x2c3   :  { %v979_v9 = vadd.f32 1e-05, %v973_v29  ;;  %v974_v7 = vmax.f32 %v972_v24, 0.0  ;;  %v1065_v36 = vsub.f32 %v2751_v43, %v1035_v52  ;;  %v1098_v59 = vrot.slane %v1954_v16, %v2628_v49 }
 0x2c4   :  { %v1067_v25 = vadd.f32 1e-05, %v1061_v26  ;;  %v1062_v22 = vmax.f32 %v1060_v6, 0.0  ;;  %v997_v61 = vrot.slane %v1951_v5, %v2633_v58  ;;  %v1014_v45 = vrot.slane %v1952_v21, %v2633_v58 }
 0x2c5   :  { %2106 = vrsqrt.f32 %v979_v9  ;;  %v980_v23 = vadd.f32 1e-05, %v974_v7  ;;  %v1085_v47 = vrot.slane %v1953_v20, %v2633_v58  ;;  %v1102_v63 = vrot.slane %v1954_v16, %v2633_v58 }
 0x2c6   :  { %2108 = vrsqrt.f32 %v1067_v25  ;;  %v1068_v4 = vadd.f32 1e-05, %v1062_v22  ;;  %v976_v62 = vsub.f32 %v2745_v37, %v948_v50  ;;  %v978_v43 = vsub.f32 %v2769_v44, %v948_v50 }
 0x2c7   :  { %2110 = vrsqrt.f32 %v980_v23  ;;  %v1064_v52 = vsub.f32 %v2747_v39, %v1036_v12  ;;  %v1066_v51 = vsub.f32 %v2771_v55, %v1036_v12 }
 0x2c8   :  { %2112 = vrsqrt.f32 %v1068_v4 }
 0x2d2   :  { %v2107_v1 = vpop.eup %2106 }
 0x2d3   :  { %v2109_v60 = vpop.eup %2108  ;;  %v983_v33 = vmul.f32 %v2107_v1, %v975_v2  ;;  %v985_v35 = vmul.f32 %v2107_v1, %v977_v3 }
 0x2d4   :  { %v1071_v42 = vmul.f32 %v2109_v60, %v1063_v19  ;;  %v1073_v41 = vmul.f32 %v2109_v60, %v1065_v36  ;;  %v2111_v49 = vpop.eup %2110 }
 0x2d5   :  { %v1000_v34 = vmul.f32 %v993_v18, %v983_v33  ;;  %v1002_v38 = vmul.f32 %v993_v18, %v985_v35  ;;  %v2113_v32 = vpop.eup %2112  ;;  %v984_v54 = vmul.f32 %v2111_v49, %v976_v62  ;;  %v986_v58 = vmul.f32 %v2111_v49, %v978_v43 }
 0x2d6   :  { %v1088_v46 = vmul.f32 %v1081_v0, %v1071_v42  ;;  %v1090_v48 = vmul.f32 %v1081_v0, %v1073_v41  ;;  %v1072_v37 = vmul.f32 %v2113_v32, %v1064_v52  ;;  %v1074_v44 = vmul.f32 %v2113_v32, %v1066_v51 }
 0x2d7   :  { %v2809_v40 = vadd.f32 %v1010_v17, %v1000_v34  ;;  %v2811_v53 = vadd.f32 %v1010_v17, %v1002_v38  ;;  %v1001_v15 = vmul.f32 %v997_v61, %v984_v54  ;;  %v1003_v30 = vmul.f32 %v997_v61, %v986_v58 }
 0x2d8   :  { %v2813_v56 = vadd.f32 %v1098_v59, %v1088_v46  ;;  %v2815_v14 = vadd.f32 %v1098_v59, %v1090_v48  ;;  %v1089_v31 = vmul.f32 %v1085_v47, %v1072_v37  ;;  %v1091_v50 = vmul.f32 %v1085_v47, %v1074_v44 }
 0x2d9   :  { %v1018_v39 = vadd.f32 %v1014_v45, %v1001_v15  ;;  %v1020_v57 = vadd.f32 %v1014_v45, %v1003_v30 }
 0x2da   :  { %v1106_v55 = vadd.f32 %v1102_v63, %v1089_v31  ;;  %v1108_v12 = vadd.f32 %v1102_v63, %v1091_v50 }
 0x2db   :  { %2186 = dma.done.wait [#allocation5 + $0x1], 4096 }
 0x2dc   :  { %2187 = vsyncadd [#allocation5 + $0x1], 4294963200  ;;  %v1146_v13 = vpack.c.bf16 %v1020_v57, %v1018_v39  ;;  %v1319_v28 = vpack.c.bf16 %v1108_v12, %v1106_v55  ;;  %v2114_v29 = vld [vmem:[#allocation3 + $0x78] sm:$0xff]   ;;  %v2118_v27 = vld [vmem:[#allocation3 + $0x70] sm:$0xff]   ;;  %v1145_v42 = vpack.c.bf16 %v2811_v53, %v2809_v40  ;;  %v1318_v41 = vpack.c.bf16 %v2815_v14, %v2813_v56 }
 0x2dd   :  { %v2115_v10 = vld [vmem:[#allocation3 + $0xf8] sm:$0xff]   ;;  %2006 = vmatprep.subr.bf16.mxu1 %v2114_v29  ;;  %v2119_v8 = vld [vmem:[#allocation3 + $0xf0] sm:$0xff]   ;;  %v2122_v25 = vld [vmem:[#allocation3 + $0x68] sm:$0xff]  }
 0x2de   :  { %1276 = vmatprep.mubr.bf16.mxu1 %v1146_v13  ;;  %1449 = vmatprep.mubr.bf16.mxu0 %v1319_v28  ;;  %v2116_v11 = vld [vmem:[#allocation3 + $0x38] sm:$0xff]   ;;  %v2120_v9 = vld [vmem:[#allocation3 + $0x30] sm:$0xff]   ;;  %v2123_v6 = vld [vmem:[#allocation3 + $0xe8] sm:$0xff]  }
 0x2df   :  { %2028 = vmatprep.subr.bf16.mxu0 %v2115_v10  ;;  %v2117_v26 = vld [vmem:[#allocation3 + $0xb8] sm:$0xff]   ;;  %2007 = vmatpush3.bf16.msra.mxu1 %v2116_v11  ;;  %v2121_v24 = vld [vmem:[#allocation3 + $0xb0] sm:$0xff]   ;;  %v2124_v7 = vld [vmem:[#allocation3 + $0x28] sm:$0xff]  }
 0x2e0   :  { %2029 = vmatpush3.bf16.msra.mxu0 %v2117_v26  ;;  %2008 = vmatprep.subr.bf16.mxu1 %v2118_v27  ;;  %v2125_v22 = vld [vmem:[#allocation3 + $0xa8] sm:$0xff]   ;;  %v2126_v23 = vld [vmem:[#allocation3 + $0x60] sm:$0xff]   ;;  %v2130_v21 = vld [vmem:[#allocation3 + $0x58] sm:$0xff]  }
 0x2e1   :  { %2030 = vmatprep.subr.bf16.mxu0 %v2119_v8  ;;  %v2127_v4 = vld [vmem:[#allocation3 + $0xe0] sm:$0xff]   ;;  %v2131_v16 = vld [vmem:[#allocation3 + $0xd8] sm:$0xff]   ;;  %v2134_v18 = vld [vmem:[#allocation3 + $0x50] sm:$0xff]  }
 0x2e2   :  { %v2128_v5 = vld [vmem:[#allocation3 + $0x20] sm:$0xff]   ;;  %v2132_v2 = vld [vmem:[#allocation3 + $0x18] sm:$0xff]   ;;  %v2135_v0 = vld [vmem:[#allocation3 + $0xd0] sm:$0xff]  }
 0x2e3   :  { %2009 = vmatpush3.bf16.msra.mxu1 %v2120_v9  ;;  %v2129_v20 = vld [vmem:[#allocation3 + $0xa0] sm:$0xff]   ;;  %v2133_v3 = vld [vmem:[#allocation3 + $0x98] sm:$0xff]   ;;  %v2136_v1 = vld [vmem:[#allocation3 + $0x10] sm:$0xff]  }
 0x2e4   :  { %2031 = vmatpush3.bf16.msra.mxu0 %v2121_v24  ;;  %2010 = vmatprep.subr.bf16.mxu1 %v2122_v25  ;;  %v2137_v17 = vld [vmem:[#allocation3 + $0x90] sm:$0xff]   ;;  %v2138_v19 = vld [vmem:[#allocation3 + $0x48] sm:$0xff]   ;;  %v2142_v33 = vld [vmem:[#allocation3 + $0x40] sm:$0xff]  }
 0x2e5   :  { %2032 = vmatprep.subr.bf16.mxu0 %v2123_v6  ;;  %v2139_v36 = vld [vmem:[#allocation3 + $0xc8] sm:$0xff]   ;;  %v2143_v35 = vld [vmem:[#allocation3 + $0xc0] sm:$0xff]  }
 0x2e6   :  { %v2140_v59 = vld [vmem:[#allocation3 + $0x8] sm:$0xff]   ;;  %v2144_v61 = vld [vmem:[#allocation3] sm:$0xff]  }
 0x2e7   :  { %2011 = vmatpush3.bf16.msra.mxu1 %v2124_v7  ;;  %v2141_v60 = vld [vmem:[#allocation3 + $0x88] sm:$0xff]   ;;  %v2145_v45 = vld [vmem:[#allocation3 + $0x80] sm:$0xff]  }
 0x2e8   :  { %2033 = vmatpush3.bf16.msra.mxu0 %v2125_v22  ;;  %2012 = vmatprep.subr.bf16.mxu1 %v2126_v23  ;;  %v1147_v43 = vld [vmem:[%s2896_s3 + $0x20] ss:$0 sm:$0xff]  ;;  %v1320_v48 = vld [vmem:[%s2896_s3 + $0x28] ss:$0 sm:$0xff] }
 0x2e9   :  { %2034 = vmatprep.subr.bf16.mxu0 %v2127_v4 }
 0x2eb   :  { %2013 = vmatpush3.bf16.msra.mxu1 %v2128_v5 }
 0x2ec   :  { %2035 = vmatpush3.bf16.msra.mxu0 %v2129_v20  ;;  %2014 = vmatprep.subr.bf16.mxu1 %v2130_v21 }
 0x2ed   :  { %2036 = vmatprep.subr.bf16.mxu0 %v2131_v16 }
 0x2ef   :  { %2015 = vmatpush3.bf16.msra.mxu1 %v2132_v2 }
 0x2f0   :  { %2037 = vmatpush3.bf16.msra.mxu0 %v2133_v3  ;;  %2016 = vmatprep.subr.bf16.mxu1 %v2134_v18 }
 0x2f1   :  { %2038 = vmatprep.subr.bf16.mxu0 %v2135_v0 }
 0x2f3   :  { %2017 = vmatpush3.bf16.msra.mxu1 %v2136_v1 }
 0x2f4   :  { %2039 = vmatpush3.bf16.msra.mxu0 %v2137_v17  ;;  %2018 = vmatprep.subr.bf16.mxu1 %v2138_v19 }
 0x2f5   :  { %2040 = vmatprep.subr.bf16.mxu0 %v2139_v36 }
 0x2f7   :  { %2019 = vmatpush3.bf16.msra.mxu1 %v2140_v59 }
 0x2f8   :  { %2041 = vmatpush3.bf16.msra.mxu0 %v2141_v60  ;;  %2020 = vmatprep.subr.bf16.mxu1 %v2142_v33 }
 0x2f9   :  { %2042 = vmatprep.subr.bf16.mxu0 %v2143_v35 }
 0x2fb   :  { %2021 = vmatpush3.bf16.msra.mxu1 %v2144_v61 }
 0x2fc   :  { %2043 = vmatpush3.bf16.msra.mxu0 %v2145_v45 }
 0x2fe   :  { %1277 = vmatmul.mubr.bf16.vlgmr.msra.gmra.mxu1 %v1145_v42 }
 0x2ff   :  { %1450 = vmatmul.mubr.bf16.vlgmr.msra.gmra.mxu0 %v1318_v41 }
 0x3be   :  { %v2022_v47 = vpop.f32.mrf.mxu1 }
 0x3bf   :  { %v2044_v63 = vpop.f32.mrf.mxu0 }
 0x3c0   :  { %v2023_v34 = vpop.f32.mrf.mxu1 }
 0x3c1   :  { %v2024_v38 = vadd.f32 %v2023_v34, %v2022_v47  ;;  %v2045_v62 = vpop.f32.mrf.mxu0 }
 0x3c2   :  { %v2046_v49 = vadd.f32 %v2045_v62, %v2044_v63  ;;  %v2025_v46 = vpop.f32.mrf.mxu1  ;;  %v1485_v63 = vld [vmem:[%s2896_s3 + $0x21] ss:$0 sm:$0xff] }
 0x3c3   :  { %v2047_v52 = vpop.f32.mrf.mxu0  ;;  %v1279_v32 = vadd.f32 %v2024_v38, %v1147_v43 }
 0x3c4   :  { %v2026_v51 = vpop.f32.mrf.mxu1  ;;  %v1452_v54 = vadd.f32 %v2046_v49, %v1320_v48 }
 0x3c5   :  { %v2027_v40 = vadd.f32 %v2026_v51, %v2025_v46  ;;  %v2048_v53 = vpop.f32.mrf.mxu0  ;;  %v1466_v37 = vmul.f32 %v1279_v32, %v1279_v32  ;;  %v1518_v46 = vld [vmem:[%s2896_s3 + $0x29] ss:$0 sm:$0xff] }
 0x3c6   :  { %v2049_v58 = vadd.f32 %v2048_v53, %v2047_v52  ;;  %v1499_v30 = vmul.f32 %v1452_v54, %v1452_v54  ;;  %v1521_v53 = vld [vmem:[%s2896_s3 + $0x2a] ss:$0 sm:$0xff] }
 0x3c7   :  { %v1282_v56 = vadd.f32 %v2027_v40, %v1147_v43 }
 0x3c8   :  { %v1455_v14 = vadd.f32 %v2049_v58, %v1320_v48  ;;  %v1488_v48 = vld [vmem:[%s2896_s3 + $0x22] ss:$0 sm:$0xff] }
 0x3c9   :  { %v1458_v44 = vadd.f32 %v1282_v56, %v1279_v32  ;;  %v1467_v15 = vmul.f32 %v1282_v56, %v1282_v56 }
 0x3ca   :  { %v1491_v31 = vadd.f32 %v1455_v14, %v1452_v54  ;;  %v1500_v50 = vmul.f32 %v1455_v14, %v1455_v14 }
 0x3cb   :  { %v1459_v39 = vrot.slane %v1458_v44, 4  ;;  %v1468_v57 = vadd.f32 %v1467_v15, %v1466_v37 }
 0x3cc   :  { %v1492_v55 = vrot.slane %v1491_v31, 4  ;;  %v1501_v12 = vadd.f32 %v1500_v50, %v1499_v30 }
 0x3cd   :  { %v1460_v13 = vadd.f32 %v1459_v39, %v1458_v44  ;;  %v1469_v28 = vrot.slane %v1468_v57, 4 }
 0x3ce   :  { %v1493_v29 = vadd.f32 %v1492_v55, %v1491_v31  ;;  %v1502_v10 = vrot.slane %v1501_v12, 4 }
 0x3cf   :  { %v1461_v11 = vrot.slane %v1460_v13, 2  ;;  %v1470_v26 = vadd.f32 %v1469_v28, %v1468_v57 }
 0x3d0   :  { %v1494_v27 = vrot.slane %v1493_v29, 2  ;;  %v1503_v8 = vadd.f32 %v1502_v10, %v1501_v12 }
 0x3d1   :  { %v1462_v9 = vadd.f32 %v1461_v11, %v1460_v13  ;;  %v1471_v24 = vrot.slane %v1470_v26, 2 }
 0x3d2   :  { %v1495_v25 = vadd.f32 %v1494_v27, %v1493_v29  ;;  %v1504_v6 = vrot.slane %v1503_v8, 2 }
 0x3d3   :  { %v1463_v7 = vrot.slane %v1462_v9, 1  ;;  %v1472_v22 = vadd.f32 %v1471_v24, %v1470_v26 }
 0x3d4   :  { %v1496_v23 = vrot.slane %v1495_v25, 1  ;;  %v1505_v4 = vadd.f32 %v1504_v6, %v1503_v8 }
 0x3d5   :  { %v1464_v5 = vadd.f32 %v1463_v7, %v1462_v9  ;;  %v1473_v20 = vrot.slane %v1472_v22, 1 }
 0x3d6   :  { %v1497_v21 = vadd.f32 %v1496_v23, %v1495_v25  ;;  %v1506_v16 = vrot.slane %v1505_v4, 1 }
 0x3d7   :  { %v1465_v2 = vmul.f32 0.0625, %v1464_v5  ;;  %v1474_v3 = vadd.f32 %v1473_v20, %v1472_v22 }
 0x3d8   :  { %v1498_v18 = vmul.f32 0.0625, %v1497_v21  ;;  %v1507_v0 = vadd.f32 %v1506_v16, %v1505_v4 }
 0x3d9   :  { %v1475_v1 = vmul.f32 0.0625, %v1474_v3  ;;  %v1476_v17 = vmul.f32 %v1465_v2, %v1465_v2  ;;  %v1479_v42 = vsub.f32 %v1279_v32, %v1465_v2  ;;  %v1480_v41 = vsub.f32 %v1282_v56, %v1465_v2 }
 0x3da   :  { %v1508_v19 = vmul.f32 0.0625, %v1507_v0  ;;  %v1509_v36 = vmul.f32 %v1498_v18, %v1498_v18  ;;  %v1512_v34 = vsub.f32 %v1452_v54, %v1498_v18  ;;  %v1513_v38 = vsub.f32 %v1455_v14, %v1498_v18 }
 0x3db   :  { %v1477_v59 = vsub.f32 %v1475_v1, %v1476_v17 }
 0x3dc   :  { %v1510_v60 = vsub.f32 %v1508_v19, %v1509_v36 }
 0x3dd   :  { %v1478_v33 = vmax.f32 %v1477_v59, 0.0 }
 0x3de   :  { %v1511_v35 = vmax.f32 %v1510_v60, 0.0 }
 0x3df   :  { %v1481_v61 = vadd.f32 1e-05, %v1478_v33 }
 0x3e0   :  { %v1514_v45 = vadd.f32 1e-05, %v1511_v35 }
 0x3e1   :  { %2146 = vrsqrt.f32 %v1481_v61 }
 0x3e2   :  { %2148 = vrsqrt.f32 %v1514_v45 }
 0x3ee   :  { %v2147_v47 = vpop.eup %2146 }
 0x3ef   :  { %v2149_v62 = vpop.eup %2148  ;;  %v1483_v43 = vmul.f32 %v2147_v47, %v1479_v42  ;;  %v1484_v49 = vmul.f32 %v2147_v47, %v1480_v41 }
 0x3f0   :  { %v1516_v52 = vmul.f32 %v2149_v62, %v1512_v34  ;;  %v1517_v51 = vmul.f32 %v2149_v62, %v1513_v38 }
 0x3f1   :  { %v1486_v32 = vmul.f32 %v1485_v63, %v1483_v43  ;;  %v1487_v40 = vmul.f32 %v1485_v63, %v1484_v49 }
 0x3f2   :  { %v1519_v54 = vmul.f32 %v1518_v46, %v1516_v52  ;;  %v1520_v58 = vmul.f32 %v1518_v46, %v1517_v51 }
 0x3f3   :  { %v1489_v56 = vadd.f32 %v1488_v48, %v1486_v32  ;;  %v1490_v14 = vadd.f32 %v1488_v48, %v1487_v40 }
 0x3f4   :  { %v1522_v37 = vadd.f32 %v1521_v53, %v1519_v54  ;;  %v1523_v44 = vadd.f32 %v1521_v53, %v1520_v58 }
 0x3f5   :  { %2188 = dma.done.wait [#allocation5 + $0x2], 2048 }
 0x3f6   :  { %2189 = vsyncadd [#allocation5 + $0x2], 4294965248  ;;  %v1561_v15 = vpack.c.bf16 %v1523_v44, %v1522_v37  ;;  %v2150_v30 = vld [vmem:[#allocation4 + $0x78] sm:$0xff]   ;;  %v2152_v50 = vld [vmem:[#allocation4 + $0x70] sm:$0xff]   ;;  %v1560_v24 = vpack.c.bf16 %v1490_v14, %v1489_v56  ;;  %vm1781_vm4 = vcmask 523520  }
 0x3f7   :  { %v2151_v31 = vld [vmem:[#allocation4 + $0x38] sm:$0xff]   ;;  %2050 = vmatprep.subr.bf16.mxu1 %v2150_v30  ;;  %v2153_v39 = vld [vmem:[#allocation4 + $0x30] sm:$0xff]   ;;  %v2154_v57 = vld [vmem:[#allocation4 + $0x68] sm:$0xff]  }
 0x3f8   :  { %1691 = vmatprep.mubr.bf16.mxu1 %v1561_v15  ;;  %2051 = vmatpush3.bf16.msra.mxu1 %v2151_v31  ;;  %v2155_v55 = vld [vmem:[#allocation4 + $0x28] sm:$0xff]   ;;  %v2156_v12 = vld [vmem:[#allocation4 + $0x60] sm:$0xff]   ;;  %v2158_v28 = vld [vmem:[#allocation4 + $0x58] sm:$0xff]  }
 0x3f9   :  { %2052 = vmatprep.subr.bf16.mxu1 %v2152_v50  ;;  %v2157_v13 = vld [vmem:[#allocation4 + $0x20] sm:$0xff]   ;;  %v2159_v29 = vld [vmem:[#allocation4 + $0x18] sm:$0xff]   ;;  %v2160_v10 = vld [vmem:[#allocation4 + $0x50] sm:$0xff]  }
 0x3fa   :  { %v2161_v11 = vld [vmem:[#allocation4 + $0x10] sm:$0xff]   ;;  %v2162_v26 = vld [vmem:[#allocation4 + $0x48] sm:$0xff]   ;;  %v2164_v8 = vld [vmem:[#allocation4 + $0x40] sm:$0xff]  }
 0x3fb   :  { %v2163_v27 = vld [vmem:[#allocation4 + $0x8] sm:$0xff]   ;;  %v2165_v9 = vld [vmem:[#allocation4] sm:$0xff]  }
 0x3fc   :  { %2053 = vmatpush3.bf16.msra.mxu1 %v2153_v39  ;;  %v1562_v6 = vld [vmem:[%s2896_s3 + $0x23] ss:$0 sm:$0xff]  ;;  %v1731_v40 = vld [vmem:[%s2896_s3 + $0x24] ss:$0 sm:$0xff]  ;;  %v1734_v58 = vld [vmem:[%s2896_s3 + $0x25] ss:$0 sm:$0xff] }
 0x3fd   :  { %2054 = vmatprep.subr.bf16.mxu1 %v2154_v57 }
 0x400   :  { %2055 = vmatpush3.bf16.msra.mxu1 %v2155_v55 }
 0x401   :  { %2056 = vmatprep.subr.bf16.mxu1 %v2156_v12 }
 0x404   :  { %2057 = vmatpush3.bf16.msra.mxu1 %v2157_v13 }
 0x405   :  { %2058 = vmatprep.subr.bf16.mxu1 %v2158_v28 }
 0x408   :  { %2059 = vmatpush3.bf16.msra.mxu1 %v2159_v29 }
 0x409   :  { %2060 = vmatprep.subr.bf16.mxu1 %v2160_v10 }
 0x40c   :  { %2061 = vmatpush3.bf16.msra.mxu1 %v2161_v11 }
 0x40d   :  { %2062 = vmatprep.subr.bf16.mxu1 %v2162_v26 }
 0x410   :  { %2063 = vmatpush3.bf16.msra.mxu1 %v2163_v27 }
 0x411   :  { %2064 = vmatprep.subr.bf16.mxu1 %v2164_v8 }
 0x414   :  { %2065 = vmatpush3.bf16.msra.mxu1 %v2165_v9 }
 0x417   :  { %1692 = vmatmul.mubr.bf16.vlgmr.msra.gmra.mxu1 %v1560_v24 }
 0x4d7   :  { %v2066_v25 = vpop.f32.mrf.mxu1 }
 0x4d9   :  { %v2067_v7 = vpop.f32.mrf.mxu1 }
 0x4da   :  { %v2068_v22 = vadd.f32 %v2067_v7, %v2066_v25 }
 0x4db   :  { %v2069_v23 = vpop.f32.mrf.mxu1 }
 0x4dc   :  { %v1694_v4 = vadd.f32 %v2068_v22, %v1562_v6 }
 0x4dd   :  { %v2070_v5 = vpop.f32.mrf.mxu1 }
 0x4de   :  { %v2071_v20 = vadd.f32 %v2070_v5, %v2069_v23  ;;  %v1710_v21 = vmul.f32 %v1694_v4, %v1694_v4  ;;  %v1700_v2 = vsel %vm340_vm1, %v1694_v4, 0.0 }
 0x4e0   :  { %v1697_v16 = vadd.f32 %v2071_v20, %v1562_v6  ;;  %v1712_v1 = vsel %vm340_vm1, %v1710_v21, 0.0 }
 0x4e2   :  { %v1701_v3 = vsel %vm340_vm1, %v1697_v16, 0.0  ;;  %v1711_v18 = vmul.f32 %v1697_v16, %v1697_v16 }
 0x4e3   :  { %v1702_v0 = vadd.f32 %v1701_v3, %v1700_v2 }
 0x4e4   :  { %v1713_v17 = vsel %vm340_vm1, %v1711_v18, 0.0 }
 0x4e5   :  { %v1703_v19 = vrot.slane %v1702_v0, 4  ;;  %v1714_v36 = vadd.f32 %v1713_v17, %v1712_v1 }
 0x4e7   :  { %v1704_v59 = vadd.f32 %v1703_v19, %v1702_v0  ;;  %v1715_v60 = vrot.slane %v1714_v36, 4 }
 0x4e9   :  { %v1705_v33 = vrot.slane %v1704_v59, 2  ;;  %v1716_v35 = vadd.f32 %v1715_v60, %v1714_v36 }
 0x4eb   :  { %v1706_v61 = vadd.f32 %v1705_v33, %v1704_v59  ;;  %v1717_v45 = vrot.slane %v1716_v35, 2 }
 0x4ed   :  { %v1707_v42 = vrot.slane %v1706_v61, 1  ;;  %v1718_v41 = vadd.f32 %v1717_v45, %v1716_v35 }
 0x4ef   :  { %v1708_v47 = vadd.f32 %v1707_v42, %v1706_v61  ;;  %v1719_v63 = vrot.slane %v1718_v41, 1 }
 0x4f1   :  { %v1709_v34 = vmul.f32 0.0625, %v1708_v47  ;;  %v1720_v38 = vadd.f32 %v1719_v63, %v1718_v41 }
 0x4f3   :  { %v1721_v62 = vmul.f32 0.0625, %v1720_v38  ;;  %v1722_v43 = vmul.f32 %v1709_v34, %v1709_v34  ;;  %v1725_v52 = vsub.f32 %v1694_v4, %v1709_v34  ;;  %v1726_v51 = vsub.f32 %v1697_v16, %v1709_v34 }
 0x4f5   :  { %v1723_v49 = vsub.f32 %v1721_v62, %v1722_v43 }
 0x4f7   :  { %v1724_v46 = vmax.f32 %v1723_v49, 0.0 }
 0x4f9   :  { %v1727_v48 = vadd.f32 1e-05, %v1724_v46 }
 0x4fb   :  { %2166 = vrsqrt.f32 %v1727_v48 }
 0x508   :  { %v2167_v32 = vpop.eup %2166 }
 0x509   :  { %v1729_v53 = vmul.f32 %v2167_v32, %v1725_v52  ;;  %v1730_v54 = vmul.f32 %v2167_v32, %v1726_v51 }
 0x50b   :  { %v1732_v56 = vmul.f32 %v1731_v40, %v1729_v53  ;;  %v1733_v14 = vmul.f32 %v1731_v40, %v1730_v54 }
 0x50d   :  { %v1735_v37 = vadd.f32 %v1734_v58, %v1732_v56  ;;  %v1736_v44 = vadd.f32 %v1734_v58, %v1733_v14 }
 0x50f   :  { %vm1737_vm3 = vcmp.gt.f32.partialorder %v1735_v37, 0.0  ;;  %v1739_v15 = vmul.f32 0.01, %v1735_v37  ;;  %v1740_v30 = vmul.f32 0.01, %v1736_v44  ;;  %vm1738_vm5 = vcmp.gt.f32.partialorder %v1736_v44, 0.0 }
 0x511   :  { %v2852_v31 = vsel %vm1737_vm3, %v1735_v37, %v1739_v15  ;;  %v1742_v39 = vsel %vm1738_vm5, %v1736_v44, %v1740_v30 }
 0x512   :  { %v1782_v50 = vsel %vm1781_vm4, %v2852_v31, -inf  ;;  %v1785_v57 = vsel %vm1781_vm4, %v1742_v39, -inf  ;;  %v1757_v25 = vsel %vm337_vm0, %v2852_v31, -inf  ;;  %v1760_v6 = vsel %vm337_vm0, %v1742_v39, -inf }
 0x513   :  { %1783 = vmax.xlane.f32.xlu0 %v1782_v50 }
 0x517   :  { %1786 = vmax.xlane.f32.xlu0 %v1785_v57 }
 0x59c   :  { %v1784_v55 = vpop.xlane.xlu0 %1783 }
 0x59d   :  { %v1788_v12 = vsub.f32 %v2852_v31, %v1784_v55 }
 0x59f   :  { %v1790_v13 = vmul.f32 1.442695, %v1788_v12 }
 0x5a0   :  { %v1787_v28 = vpop.xlane.xlu0 %1786 }
 0x5a1   :  { %2168 = vpow2.f32 %v1790_v13  ;;  %v1789_v29 = vsub.f32 %v1742_v39, %v1787_v28 }
 0x5a3   :  { %v1792_v10 = vmul.f32 1.442695, %v1789_v29 }
 0x5a5   :  { %2170 = vpow2.f32 %v1792_v10 }
 0x5ae   :  { %v2169_v11 = vpop.eup %2168 }
 0x5af   :  { %1796 = vrot.lane.b32.xlu1 %v2169_v11, %s2192_s13 }
 0x5b2   :  { %v2171_v26 = vpop.eup %2170 }
 0x5b3   :  { %1798 = vrot.lane.b32.xlu1 %v2171_v26, %s2192_s13 }
 0x621   :  { %v1797_v27 = vpop.permute.xlu1 %1796 }
 0x622   :  { %v1802_v8 = vsel %vm337_vm0, %v1797_v27, 0.0 }
 0x623   :  { %1803 = vadd.xlane.f32.xlu0 %v1802_v8 }
 0x625   :  { %v1799_v9 = vpop.permute.xlu1 %1798 }
 0x626   :  { %v1805_v24 = vsel %vm337_vm0, %v1799_v9, 0.0 }
 0x627   :  { %1806 = vadd.xlane.f32.xlu1 %v1805_v24  ;;  %1758 = vmax.xlane.f32.xlu0 %v1757_v25 }
 0x62b   :  { %1761 = vmax.xlane.f32.xlu0 %v1760_v6 }
 0x641   :  { %1745 = vrot.lane.b32.xlu0 %v2852_v31, %s2192_s13 }
 0x645   :  { %1747 = vrot.lane.b32.xlu0 %v1742_v39, %s2192_s13 }
 0x6ac   :  { %v1804_v7 = vpop.xlane.xlu0 %1803 }
 0x6ad   :  { %2172 = vrcp.f32 %v1804_v7 }
 0x6b0   :  { %v1807_v22 = vpop.xlane.xlu1 %1806  ;;  %v1759_v20 = vpop.xlane.xlu0 %1758 }
 0x6b1   :  { %2174 = vrcp.f32 %v1807_v22  ;;  %v1763_v2 = vsub.f32 %v2852_v31, %v1759_v20 }
 0x6b3   :  { %v1765_v18 = vmul.f32 1.442695, %v1763_v2 }
 0x6b4   :  { %v1762_v16 = vpop.xlane.xlu0 %1761 }
 0x6b5   :  { %v1764_v3 = vsub.f32 %v1742_v39, %v1762_v16  ;;  %2176 = vpow2.f32 %v1765_v18 }
 0x6b7   :  { %v1767_v0 = vmul.f32 1.442695, %v1764_v3 }
 0x6b8   :  { %v1746_v59 = vpop.permute.xlu0 %1745 }
 0x6b9   :  { %2178 = vpow2.f32 %v1767_v0  ;;  %v1751_v60 = vmul.f32 %v1746_v59, %v2852_v31 }
 0x6ba   :  { %v2173_v23 = vpop.eup %2172 }
 0x6bb   :  { %v1810_v4 = vmul.f32 %v2173_v23, %v2169_v11  ;;  %v1753_v35 = vadd.f32 %v1751_v60, %v2852_v31 }
 0x6bc   :  { %v1748_v33 = vpop.permute.xlu0 %1747 }
 0x6bd   :  { %1814 = vrot.lane.b32.xlu1 %v1810_v4, %s2192_s13  ;;  %v1752_v61 = vmul.f32 %v1748_v33, %v1742_v39  ;;  %v1755_v45 = vadd.f32 %v1753_v35, %v1746_v59 }
 0x6be   :  { %v2175_v5 = vpop.eup %2174 }
 0x6bf   :  { %v1811_v21 = vmul.f32 %v2175_v5, %v2171_v26  ;;  %v1754_v42 = vadd.f32 %v1752_v61, %v1742_v39 }
 0x6c1   :  { %1816 = vrot.lane.b32.xlu0 %v1811_v21, %s2192_s13  ;;  %v1756_v63 = vadd.f32 %v1754_v42, %v1748_v33 }
 0x6c2   :  { %v2177_v1 = vpop.eup %2176 }
 0x6c3   :  { %v1769_v19 = vsel %vm337_vm0, %v2177_v1, 0.0 }
 0x6c6   :  { %v2179_v17 = vpop.eup %2178 }
 0x6c7   :  { %v1772_v36 = vsel %vm337_vm0, %v2179_v17, 0.0 }
 0x6e0   :  { %1770 = vadd.xlane.f32.xlu0 %v1769_v19 }
 0x6e1   :  { %1773 = vadd.xlane.f32.xlu1 %v1772_v36 }
 0x6f2   :  { %1824 = vrot.lane.b32.xlu1 %v1742_v39, %s2191_s10 }
 0x6f6   :  { %1822 = vrot.lane.b32.xlu0 %v2852_v31, %s2191_s10  ;;  %1838 = vrot.lane.b32.xlu1 %v1742_v39, %s2190_s9 }
 0x72f   :  { %v1815_v41 = vpop.permute.xlu1 %1814 }
 0x730   :  { %v1820_v47 = vmul.f32 %v1815_v41, %v1755_v45 }
 0x732   :  { %1830 = vrot.lane.b32.xlu0 %v1820_v47, %s2190_s9 }
 0x733   :  { %v1817_v34 = vpop.permute.xlu0 %1816 }
 0x734   :  { %v1821_v38 = vmul.f32 %v1817_v34, %v1756_v63 }
 0x736   :  { %1832 = vrot.lane.b32.xlu0 %v1821_v38, %s2190_s9 }
 0x73a   :  { %1836 = vrot.lane.b32.xlu0 %v2852_v31, %s2190_s9 }
 0x769   :  { %v1771_v43 = vpop.xlane.xlu0 %1770 }
 0x76a   :  { %v1774_v62 = vpop.xlane.xlu1 %1773 }
 0x76b   :  { %2180 = vrcp.f32 %v1774_v62 }
 0x76c   :  { %2182 = vrcp.f32 %v1771_v43 }
 0x76d   :  { %v1823_v48 = vpop.permute.xlu0 %1822 }
 0x76e   :  { %v1825_v32 = vpop.permute.xlu1 %1824 }
 0x772   :  { %v1839_v14 = vpop.permute.xlu1 %1838 }
 0x778   :  { %v2181_v49 = vpop.eup %2180 }
 0x779   :  { %v2183_v46 = vpop.eup %2182  ;;  %v1778_v52 = vmul.f32 %v2181_v49, %v2179_v17 }
 0x77a   :  { %v1777_v51 = vmul.f32 %v2183_v46, %v2177_v1 }
 0x77b   :  { %v1780_v40 = vmul.f32 %v1778_v52, %v1756_v63 }
 0x77c   :  { %v1779_v54 = vmul.f32 %v1777_v51, %v1755_v45 }
 0x77d   :  { %v1843_v58 = vsel %vm337_vm0, %v1780_v40, %v1825_v32 }
 0x77e   :  { %v1842_v15 = vsel %vm337_vm0, %v1779_v54, %v1823_v48 }
 0x7a4   :  { %v1831_v53 = vpop.permute.xlu0 %1830 }
 0x7a5   :  { %v1844_v30 = vsel %vm340_vm1, %v1842_v15, %v1831_v53 }
 0x7a8   :  { %v1833_v56 = vpop.permute.xlu0 %1832 }
 0x7a9   :  { %v1845_v37 = vsel %vm340_vm1, %v1843_v58, %v1833_v56 }
 0x7aa   :  { %v1847_v44 = vsel %vm343_vm2, %v1845_v37, %v1839_v14 }
 0x7ab   :  { %1849 = vst [vmem:[%s2901_s8 + $0x8] sm:$0xff] %v1847_v44 }
 0x7ac   :  { %v1837_v31 = vpop.permute.xlu0 %1836 }
 0x7ad   :  { %v1846_v50 = vsel %vm343_vm2, %v1844_v30, %v1837_v31 }
 0x7ae   :  { %1848 = vst [vmem:[%s2901_s8] sm:$0xff] %v1846_v50 }
 0x7af   :  { %1854 = vsyncmov [#allocation5] }
 0x7b2   :  { %s1855_s14 = vpop.sfrf %1854 }
 0x7b3   :  { %p2003_p0 = scmp.ne.s32.totalorder %s1855_s14, 0 }
 0x7b5   :  { %1859 = shalt.err (%p2003_p0)  }
 0x7b6   :  { %1861 = vsyncmov [#allocation5 + $0x1] }
 0x7b9   :  { %s1862_s15 = vpop.sfrf %1861 }
 0x7ba   :  { %p2004_p1 = scmp.ne.s32.totalorder %s1862_s15, 0 }
 0x7bc   :  { %1866 = shalt.err (%p2004_p1)  }
 0x7bd   :  { %1868 = vsyncmov [#allocation5 + $0x2] }
 0x7c0   :  { %s1869_s16 = vpop.sfrf %1868 }
 0x7c1   :  { %p2005_p2 = scmp.ne.s32.totalorder %s1869_s16, 0 }
 0x7c3   :  { %1873 = shalt.err (%p2005_p2)  }

</bundles_post_ra>
